<compile_context>
chip_gen: v7x
topology: tpu7x:2x2x1
jax: 0.10.0
libtpu: 0.0.40
codegen_flags: <defaults>
</compile_context>

<pallas_src>
import functools

import jax
import jax.numpy as jnp
from jax.experimental import pallas as pl
from jax.experimental.pallas import tpu as pltpu

_HIGHEST = jax.lax.Precision.HIGHEST


def _attention_kernel(x_ref, wqkv_t_ref, wproj_t_ref, bproj_ref,
                      out_ref, attn_ref, *, batch, seq, num_heads, head_dim):
    """Single gridless step: whole (B, N, C) problem resident in VMEM.

    x_ref      : (B, N, C)      VMEM
    wqkv_t_ref : (C, 3C)        VMEM  (pre-transposed; q columns pre-scaled)
    wproj_t_ref: (C, C)         VMEM  (pre-transposed)
    bproj_ref  : (1, C)         VMEM
    out_ref    : (B*N, C)       VMEM  (wrapper reshapes to (B, N, C))
    attn_ref   : (B, H, N, N)   VMEM
    """
    B, N, H, hd = batch, seq, num_heads, head_dim
    C = H * hd

    # qkv projection for every (batch, token) row at once: (B*N, C) @ (C, 3C).
    x2d = x_ref[...].reshape(B * N, C)
    qkv = jnp.dot(x2d, wqkv_t_ref[...],
                  preferred_element_type=jnp.float32,
                  precision=_HIGHEST)                               # (B*N, 3C)

    wproj_t = wproj_t_ref[...]                                      # (C, C)
    # Distribute the output projection over heads into one f32 accumulator --
    # removes the narrow-lane concatenate of head outputs entirely.
    out_acc = jnp.zeros((B * N, C), jnp.float32)

    for h in range(H):                          # short static loop (H = 4)
        lo = h * hd
        # q-scale is already folded into the prepared qkv weight.
        q_h = qkv[:, lo:lo + hd].reshape(B, N, hd)                  # (B, N, hd)
        k_h = qkv[:, C + lo:C + lo + hd].reshape(B, N, hd)
        v_h = qkv[:, 2 * C + lo:2 * C + lo + hd].reshape(B, N, hd)

        # scores: contract q/k on head_dim -- batched over B, no explicit k.T.
        s = jnp.einsum('bqd,bkd->bqk', q_h, k_h,
                       preferred_element_type=jnp.float32,
                       precision=_HIGHEST)                          # (B, N, N)

        # numerically-stable softmax along the key axis; EXACT normalization
        # (the probabilities are part of the module's public return value).
        s_max = jnp.max(s, axis=-1, keepdims=True)
        p = jnp.exp(s - s_max)
        p = p / jnp.sum(p, axis=-1, keepdims=True)

        # one slab store per head (previously B masked stores per head).
        attn_ref[:, h, :, :] = p
        # TODO(synk): a fully lane-dense (B, H*N*N) attn slab (reshaped in the
        # wrapper) needs an in-kernel (B,N,N)->(B,N*N) relayout per head;
        # A/B-measure on hardware before adopting (per perf review).

        # per-head attn @ v, pushed straight through the matching row-slice of
        # the output projection and accumulated (no head concatenate).
        av = jnp.einsum('bqk,bkd->bqd', p, v_h,
                        preferred_element_type=jnp.float32,
                        precision=_HIGHEST).reshape(B * N, hd)
        out_acc = out_acc + jnp.dot(av, wproj_t[lo:lo + hd, :],
                                    preferred_element_type=jnp.float32,
                                    precision=_HIGHEST)

    # output projection bias; store once as a (B*N, C) slab.
    out_ref[...] = out_acc + bproj_ref[...]


def prepare_params(w_qkv, w_proj, b_proj, *, num_heads):
    """One-time parameter prep (outside the per-call hot path).

    Pre-transposes the linear weights so the kernel does plain x @ W^T matmuls,
    and folds the q * scale factor into the q rows of the qkv weight
    (mathematically equivalent to scaling q after the projection).
    """
    all_head_dim = w_qkv.shape[0] // 3
    head_dim = all_head_dim // num_heads
    scale = head_dim ** (-0.5)

    w_qkv_t = jnp.asarray(w_qkv, jnp.float32).T                    # (C, 3C)
    w_qkv_t = w_qkv_t.at[:, :all_head_dim].multiply(scale)         # fold q*scale
    w_proj_t = jnp.asarray(w_proj, jnp.float32).T                  # (C, C)
    b_proj_2d = jnp.asarray(b_proj, jnp.float32).reshape(1, -1)    # (1, C)
    return w_qkv_t, w_proj_t, b_proj_2d


def attention_forward(x, w_qkv_t, w_proj_t, b_proj_2d, *, num_heads):
    """x: (B, N, C); prepared weights from prepare_params()."""
    B, N, C = x.shape
    head_dim = C // num_heads

    kernel = functools.partial(_attention_kernel,
                               batch=B, seq=N,
                               num_heads=num_heads, head_dim=head_dim)

    # Advisory cost estimate: lets XLA treat this custom call as tiny and
    # overlap surrounding HLO instead of serializing around it.
    flops = (2 * B * N * C * 3 * C                      # qkv projection
             + 2 * B * num_heads * N * N * head_dim     # q @ k^T
             + 2 * B * num_heads * N * N * head_dim     # attn @ v
             + 2 * B * N * C * C)                       # output projection
    bytes_accessed = 4 * (B * N * C + C * 3 * C + C * C + C
                          + B * N * C + B * num_heads * N * N)
    cost = pl.CostEstimate(flops=flops,
                           transcendentals=B * num_heads * N * N,
                           bytes_accessed=bytes_accessed)

    vmem = pl.BlockSpec(memory_space=pltpu.MemorySpace.VMEM)
    # Gridless: whole problem (< 50 KiB) resident in VMEM in one step.
    # TODO(synk): once B (or B*H) grows, switch to grid=(B,) with
    # dimension_semantics=("parallel",) so v7x's two TensorCores are both used;
    # at B=2 the per-grid-step overhead makes that roughly neutral.
    out2d, attn = pl.pallas_call(
        kernel,
        out_shape=(
            jax.ShapeDtypeStruct((B * N, C), jnp.float32),
            jax.ShapeDtypeStruct((B, num_heads, N, N), jnp.float32),
        ),
        in_specs=[vmem, vmem, vmem, vmem],
        out_specs=(vmem, vmem),
        cost_estimate=cost,
    )(x, w_qkv_t, w_proj_t, b_proj_2d)
    return out2d.reshape(B, N, C), attn


def reference_forward(x, w_qkv, w_proj, b_proj, *, num_heads):
    """Pure-JAX reference mirroring the PyTorch forward (eval mode)."""
    B, N, C = x.shape
    head_dim = C // num_heads
    scale = head_dim ** (-0.5)
    qkv = jnp.einsum('bnc,dc->bnd', x, w_qkv, precision=_HIGHEST)   # (B, N, 3C)
    qkv = qkv.reshape(B, N, 3, num_heads, head_dim).transpose(2, 0, 3, 1, 4)
    q, k, v = qkv[0], qkv[1], qkv[2]                                # (B, H, N, hd)
    attn = jnp.einsum('bhqd,bhkd->bhqk', q * scale, k, precision=_HIGHEST)
    attn = jax.nn.softmax(attn, axis=-1)
    o = jnp.einsum('bhqk,bhkd->bhqd', attn, v, precision=_HIGHEST)
    o = o.transpose(0, 2, 1, 3).reshape(B, N, C)
    o = jnp.einsum('bnc,dc->bnd', o, w_proj, precision=_HIGHEST) + b_proj
    return o, attn


if __name__ == "__main__":
    B, N, C = 2, 8, 32
    num_heads = 4

    key = jax.random.PRNGKey(0)
    kx, kqkv, kproj, kb = jax.random.split(key, 4)

    # Deterministic parameter init (nn.Linear-like scaling).
    x = jax.random.normal(kx, (B, N, C), dtype=jnp.float32)
    w_qkv = jax.random.normal(kqkv, (3 * C, C), dtype=jnp.float32) * (C ** -0.5)
    w_proj = jax.random.normal(kproj, (C, C), dtype=jnp.float32) * (C ** -0.5)
    b_proj = jax.random.normal(kb, (C,), dtype=jnp.float32) * 0.02

    # TODO(synk): qkv_bias, window_size relative-position bias, rel_pos and
    # dropout are disabled in this config (module defaults); enabling them adds
    # biases on the qkv projection and a bias-add before the softmax.

    w_qkv_t, w_proj_t, b_proj_2d = prepare_params(
        w_qkv, w_proj, b_proj, num_heads=num_heads)

    out, attn = attention_forward(x, w_qkv_t, w_proj_t, b_proj_2d,
                                  num_heads=num_heads)
    out = jax.block_until_ready(out)
    attn = jax.block_until_ready(attn)

    ref_out, ref_attn = reference_forward(x, w_qkv, w_proj, b_proj,
                                          num_heads=num_heads)

    assert out.shape == (B, N, C)
    assert attn.shape == (B, num_heads, N, N)
    # f32 math with HIGHEST-precision matmuls everywhere -> tight tolerances.
    assert jnp.allclose(out, ref_out, atol=1e-4, rtol=1e-4), "output mismatch"
    assert jnp.allclose(attn, ref_attn, atol=1e-4, rtol=1e-4), "attn mismatch"

    print("KERNEL_OK")
</pallas_src>

<mosaic_0001>
module attributes {stable_mosaic.version = 11 : i64} {
  func.func @_attention_kernel(%arg0: memref<2x8x32xf32, #tpu.memory_space<vmem>>, %arg1: memref<32x96xf32, #tpu.memory_space<vmem>>, %arg2: memref<32x32xf32, #tpu.memory_space<vmem>>, %arg3: memref<1x32xf32, #tpu.memory_space<vmem>>, %arg4: memref<16x32xf32, #tpu.memory_space<vmem>>, %arg5: memref<2x4x8x8xf32, #tpu.memory_space<vmem>>) attributes {dimension_semantics = [], scalar_prefetch = 0 : i64, scratch_operands = 0 : i64, tpu.core_type = #tpu.core_type<tc>} {
    %c0 = arith.constant 0 : index
    %c0_0 = arith.constant 0 : index
    %c0_1 = arith.constant 0 : index
    %0 = vector.load %arg0[%c0, %c0_0, %c0_1] : memref<2x8x32xf32, #tpu.memory_space<vmem>>, vector<2x8x32xf32>
    %1 = vector.shape_cast %0 : vector<2x8x32xf32> to vector<16x32xf32>
    %c0_2 = arith.constant 0 : index
    %c0_3 = arith.constant 0 : index
    %2 = vector.load %arg1[%c0_2, %c0_3] : memref<32x96xf32, #tpu.memory_space<vmem>>, vector<32x96xf32>
    %cst = arith.constant dense<0.000000e+00> : vector<16x96xf32>
    %3 = tpu.matmul %1, %2, %cst {dimension_numbers = #tpu.dot_dimension_numbers<[1], [0], [0], [1], [0, 0, 1, 1], [], []>, precision = #tpu.contract_precision<fp32>} : vector<16x32xf32>, vector<32x96xf32>, vector<16x96xf32> -> vector<16x96xf32>
    %c0_4 = arith.constant 0 : index
    %c0_5 = arith.constant 0 : index
    %4 = vector.load %arg2[%c0_4, %c0_5] : memref<32x32xf32, #tpu.memory_space<vmem>>, vector<32x32xf32>
    %cst_6 = arith.constant 0.000000e+00 : f32
    %5 = vector.broadcast %cst_6 : f32 to vector<16x32xf32>
    %6 = vector.extract_strided_slice %3 {offsets = [0, 0], sizes = [16, 8], strides = [1, 1]} : vector<16x96xf32> to vector<16x8xf32>
    %7 = vector.shape_cast %6 : vector<16x8xf32> to vector<2x8x8xf32>
    %8 = vector.extract_strided_slice %3 {offsets = [0, 32], sizes = [16, 8], strides = [1, 1]} : vector<16x96xf32> to vector<16x8xf32>
    %9 = vector.shape_cast %8 : vector<16x8xf32> to vector<2x8x8xf32>
    %10 = vector.extract_strided_slice %3 {offsets = [0, 64], sizes = [16, 8], strides = [1, 1]} : vector<16x96xf32> to vector<16x8xf32>
    %11 = vector.shape_cast %10 : vector<16x8xf32> to vector<2x8x8xf32>
    "tpu.trace_start"() <{level = 10 : i32, message = "bqd,bkd->bqk"}> : () -> ()
    %cst_7 = arith.constant dense<0.000000e+00> : vector<2x8x8xf32>
    %12 = tpu.matmul %7, %9, %cst_7 {dimension_numbers = #tpu.dot_dimension_numbers<[2], [2], [1], [1], [0, 0, 0, 1, 1, 1], [0], [0]>, precision = #tpu.contract_precision<fp32>} : vector<2x8x8xf32>, vector<2x8x8xf32>, vector<2x8x8xf32> -> vector<2x8x8xf32>
    "tpu.trace_stop"() : () -> ()
    %cst_8 = arith.constant dense<0xFF800000> : vector<2x8xf32>
    %13 = vector.multi_reduction <maximumf>, %12, %cst_8 [2] : vector<2x8x8xf32> to vector<2x8xf32>
    %14 = vector.shape_cast %13 : vector<2x8xf32> to vector<2x8x1xf32>
    %15 = vector.broadcast %14 : vector<2x8x1xf32> to vector<2x8x8xf32>
    %16 = arith.subf %12, %15 : vector<2x8x8xf32>
    %17 = math.exp %16 : vector<2x8x8xf32>
    %cst_9 = arith.constant dense<0.000000e+00> : vector<2x8xf32>
    %18 = vector.multi_reduction <add>, %17, %cst_9 [2] : vector<2x8x8xf32> to vector<2x8xf32>
    %19 = vector.shape_cast %18 : vector<2x8xf32> to vector<2x8x1xf32>
    %20 = vector.broadcast %19 : vector<2x8x1xf32> to vector<2x8x8xf32>
    %21 = arith.divf %17, %20 : vector<2x8x8xf32>
    %c0_10 = arith.constant 0 : index
    %c0_11 = arith.constant 0 : index
    %c0_12 = arith.constant 0 : index
    %c0_13 = arith.constant 0 : index
    %22 = vector.load %arg5[%c0_10, %c0_11, %c0_12, %c0_13] : memref<2x4x8x8xf32, #tpu.memory_space<vmem>>, vector<2x1x8x8xf32>
    %23 = vector.shape_cast %22 : vector<2x1x8x8xf32> to vector<2x8x8xf32>
    %24 = vector.shape_cast %21 : vector<2x8x8xf32> to vector<2x1x8x8xf32>
    tpu.vector_store %arg5[%c0_10, %c0_11, %c0_12, %c0_13], %24 {strides = array<i32>} : memref<2x4x8x8xf32, #tpu.memory_space<vmem>>, vector<2x1x8x8xf32>,
    "tpu.trace_start"() <{level = 10 : i32, message = "bqk,bkd->bqd"}> : () -> ()
    %cst_14 = arith.constant dense<0.000000e+00> : vector<2x8x8xf32>
    %25 = tpu.matmul %21, %11, %cst_14 {dimension_numbers = #tpu.dot_dimension_numbers<[2], [1], [1], [2], [0, 0, 0, 1, 1, 2], [0], [0]>, precision = #tpu.contract_precision<fp32>} : vector<2x8x8xf32>, vector<2x8x8xf32>, vector<2x8x8xf32> -> vector<2x8x8xf32>
    "tpu.trace_stop"() : () -> ()
    %26 = vector.shape_cast %25 : vector<2x8x8xf32> to vector<16x8xf32>
    %27 = vector.extract_strided_slice %4 {offsets = [0, 0], sizes = [8, 32], strides = [1, 1]} : vector<32x32xf32> to vector<8x32xf32>
    %cst_15 = arith.constant dense<0.000000e+00> : vector<16x32xf32>
    %28 = tpu.matmul %26, %27, %cst_15 {dimension_numbers = #tpu.dot_dimension_numbers<[1], [0], [0], [1], [0, 0, 1, 1], [], []>, precision = #tpu.contract_precision<fp32>} : vector<16x8xf32>, vector<8x32xf32>, vector<16x32xf32> -> vector<16x32xf32>
    %29 = arith.addf %5, %28 : vector<16x32xf32>
    %30 = vector.extract_strided_slice %3 {offsets = [0, 8], sizes = [16, 8], strides = [1, 1]} : vector<16x96xf32> to vector<16x8xf32>
    %31 = vector.shape_cast %30 : vector<16x8xf32> to vector<2x8x8xf32>
    %32 = vector.extract_strided_slice %3 {offsets = [0, 40], sizes = [16, 8], strides = [1, 1]} : vector<16x96xf32> to vector<16x8xf32>
    %33 = vector.shape_cast %32 : vector<16x8xf32> to vector<2x8x8xf32>
    %34 = vector.extract_strided_slice %3 {offsets = [0, 72], sizes = [16, 8], strides = [1, 1]} : vector<16x96xf32> to vector<16x8xf32>
    %35 = vector.shape_cast %34 : vector<16x8xf32> to vector<2x8x8xf32>
    "tpu.trace_start"() <{level = 10 : i32, message = "bqd,bkd->bqk"}> : () -> ()
    %cst_16 = arith.constant dense<0.000000e+00> : vector<2x8x8xf32>
    %36 = tpu.matmul %31, %33, %cst_16 {dimension_numbers = #tpu.dot_dimension_numbers<[2], [2], [1], [1], [0, 0, 0, 1, 1, 1], [0], [0]>, precision = #tpu.contract_precision<fp32>} : vector<2x8x8xf32>, vector<2x8x8xf32>, vector<2x8x8xf32> -> vector<2x8x8xf32>
    "tpu.trace_stop"() : () -> ()
    %cst_17 = arith.constant dense<0xFF800000> : vector<2x8xf32>
    %37 = vector.multi_reduction <maximumf>, %36, %cst_17 [2] : vector<2x8x8xf32> to vector<2x8xf32>
    %38 = vector.shape_cast %37 : vector<2x8xf32> to vector<2x8x1xf32>
    %39 = vector.broadcast %38 : vector<2x8x1xf32> to vector<2x8x8xf32>
    %40 = arith.subf %36, %39 : vector<2x8x8xf32>
    %41 = math.exp %40 : vector<2x8x8xf32>
    %cst_18 = arith.constant dense<0.000000e+00> : vector<2x8xf32>
    %42 = vector.multi_reduction <add>, %41, %cst_18 [2] : vector<2x8x8xf32> to vector<2x8xf32>
    %43 = vector.shape_cast %42 : vector<2x8xf32> to vector<2x8x1xf32>
    %44 = vector.broadcast %43 : vector<2x8x1xf32> to vector<2x8x8xf32>
    %45 = arith.divf %41, %44 : vector<2x8x8xf32>
    %c0_19 = arith.constant 0 : index
    %c1 = arith.constant 1 : index
    %c0_20 = arith.constant 0 : index
    %c0_21 = arith.constant 0 : index
    %46 = vector.load %arg5[%c0_19, %c1, %c0_20, %c0_21] : memref<2x4x8x8xf32, #tpu.memory_space<vmem>>, vector<2x1x8x8xf32>
    %47 = vector.shape_cast %46 : vector<2x1x8x8xf32> to vector<2x8x8xf32>
    %48 = vector.shape_cast %45 : vector<2x8x8xf32> to vector<2x1x8x8xf32>
    tpu.vector_store %arg5[%c0_19, %c1, %c0_20, %c0_21], %48 {strides = array<i32>} : memref<2x4x8x8xf32, #tpu.memory_space<vmem>>, vector<2x1x8x8xf32>,
    "tpu.trace_start"() <{level = 10 : i32, message = "bqk,bkd->bqd"}> : () -> ()
    %cst_22 = arith.constant dense<0.000000e+00> : vector<2x8x8xf32>
    %49 = tpu.matmul %45, %35, %cst_22 {dimension_numbers = #tpu.dot_dimension_numbers<[2], [1], [1], [2], [0, 0, 0, 1, 1, 2], [0], [0]>, precision = #tpu.contract_precision<fp32>} : vector<2x8x8xf32>, vector<2x8x8xf32>, vector<2x8x8xf32> -> vector<2x8x8xf32>
    "tpu.trace_stop"() : () -> ()
    %50 = vector.shape_cast %49 : vector<2x8x8xf32> to vector<16x8xf32>
    %51 = vector.extract_strided_slice %4 {offsets = [8, 0], sizes = [8, 32], strides = [1, 1]} : vector<32x32xf32> to vector<8x32xf32>
    %cst_23 = arith.constant dense<0.000000e+00> : vector<16x32xf32>
    %52 = tpu.matmul %50, %51, %cst_23 {dimension_numbers = #tpu.dot_dimension_numbers<[1], [0], [0], [1], [0, 0, 1, 1], [], []>, precision = #tpu.contract_precision<fp32>} : vector<16x8xf32>, vector<8x32xf32>, vector<16x32xf32> -> vector<16x32xf32>
    %53 = arith.addf %29, %52 : vector<16x32xf32>
    %54 = vector.extract_strided_slice %3 {offsets = [0, 16], sizes = [16, 8], strides = [1, 1]} : vector<16x96xf32> to vector<16x8xf32>
    %55 = vector.shape_cast %54 : vector<16x8xf32> to vector<2x8x8xf32>
    %56 = vector.extract_strided_slice %3 {offsets = [0, 48], sizes = [16, 8], strides = [1, 1]} : vector<16x96xf32> to vector<16x8xf32>
    %57 = vector.shape_cast %56 : vector<16x8xf32> to vector<2x8x8xf32>
    %58 = vector.extract_strided_slice %3 {offsets = [0, 80], sizes = [16, 8], strides = [1, 1]} : vector<16x96xf32> to vector<16x8xf32>
    %59 = vector.shape_cast %58 : vector<16x8xf32> to vector<2x8x8xf32>
    "tpu.trace_start"() <{level = 10 : i32, message = "bqd,bkd->bqk"}> : () -> ()
    %cst_24 = arith.constant dense<0.000000e+00> : vector<2x8x8xf32>
    %60 = tpu.matmul %55, %57, %cst_24 {dimension_numbers = #tpu.dot_dimension_numbers<[2], [2], [1], [1], [0, 0, 0, 1, 1, 1], [0], [0]>, precision = #tpu.contract_precision<fp32>} : vector<2x8x8xf32>, vector<2x8x8xf32>, vector<2x8x8xf32> -> vector<2x8x8xf32>
    "tpu.trace_stop"() : () -> ()
    %cst_25 = arith.constant dense<0xFF800000> : vector<2x8xf32>
    %61 = vector.multi_reduction <maximumf>, %60, %cst_25 [2] : vector<2x8x8xf32> to vector<2x8xf32>
    %62 = vector.shape_cast %61 : vector<2x8xf32> to vector<2x8x1xf32>
    %63 = vector.broadcast %62 : vector<2x8x1xf32> to vector<2x8x8xf32>
    %64 = arith.subf %60, %63 : vector<2x8x8xf32>
    %65 = math.exp %64 : vector<2x8x8xf32>
    %cst_26 = arith.constant dense<0.000000e+00> : vector<2x8xf32>
    %66 = vector.multi_reduction <add>, %65, %cst_26 [2] : vector<2x8x8xf32> to vector<2x8xf32>
    %67 = vector.shape_cast %66 : vector<2x8xf32> to vector<2x8x1xf32>
    %68 = vector.broadcast %67 : vector<2x8x1xf32> to vector<2x8x8xf32>
    %69 = arith.divf %65, %68 : vector<2x8x8xf32>
    %c0_27 = arith.constant 0 : index
    %c2 = arith.constant 2 : index
    %c0_28 = arith.constant 0 : index
    %c0_29 = arith.constant 0 : index
    %70 = vector.load %arg5[%c0_27, %c2, %c0_28, %c0_29] : memref<2x4x8x8xf32, #tpu.memory_space<vmem>>, vector<2x1x8x8xf32>
    %71 = vector.shape_cast %70 : vector<2x1x8x8xf32> to vector<2x8x8xf32>
    %72 = vector.shape_cast %69 : vector<2x8x8xf32> to vector<2x1x8x8xf32>
    tpu.vector_store %arg5[%c0_27, %c2, %c0_28, %c0_29], %72 {strides = array<i32>} : memref<2x4x8x8xf32, #tpu.memory_space<vmem>>, vector<2x1x8x8xf32>,
    "tpu.trace_start"() <{level = 10 : i32, message = "bqk,bkd->bqd"}> : () -> ()
    %cst_30 = arith.constant dense<0.000000e+00> : vector<2x8x8xf32>
    %73 = tpu.matmul %69, %59, %cst_30 {dimension_numbers = #tpu.dot_dimension_numbers<[2], [1], [1], [2], [0, 0, 0, 1, 1, 2], [0], [0]>, precision = #tpu.contract_precision<fp32>} : vector<2x8x8xf32>, vector<2x8x8xf32>, vector<2x8x8xf32> -> vector<2x8x8xf32>
    "tpu.trace_stop"() : () -> ()
    %74 = vector.shape_cast %73 : vector<2x8x8xf32> to vector<16x8xf32>
    %75 = vector.extract_strided_slice %4 {offsets = [16, 0], sizes = [8, 32], strides = [1, 1]} : vector<32x32xf32> to vector<8x32xf32>
    %cst_31 = arith.constant dense<0.000000e+00> : vector<16x32xf32>
    %76 = tpu.matmul %74, %75, %cst_31 {dimension_numbers = #tpu.dot_dimension_numbers<[1], [0], [0], [1], [0, 0, 1, 1], [], []>, precision = #tpu.contract_precision<fp32>} : vector<16x8xf32>, vector<8x32xf32>, vector<16x32xf32> -> vector<16x32xf32>
    %77 = arith.addf %53, %76 : vector<16x32xf32>
    %78 = vector.extract_strided_slice %3 {offsets = [0, 24], sizes = [16, 8], strides = [1, 1]} : vector<16x96xf32> to vector<16x8xf32>
    %79 = vector.shape_cast %78 : vector<16x8xf32> to vector<2x8x8xf32>
    %80 = vector.extract_strided_slice %3 {offsets = [0, 56], sizes = [16, 8], strides = [1, 1]} : vector<16x96xf32> to vector<16x8xf32>
    %81 = vector.shape_cast %80 : vector<16x8xf32> to vector<2x8x8xf32>
    %82 = vector.extract_strided_slice %3 {offsets = [0, 88], sizes = [16, 8], strides = [1, 1]} : vector<16x96xf32> to vector<16x8xf32>
    %83 = vector.shape_cast %82 : vector<16x8xf32> to vector<2x8x8xf32>
    "tpu.trace_start"() <{level = 10 : i32, message = "bqd,bkd->bqk"}> : () -> ()
    %cst_32 = arith.constant dense<0.000000e+00> : vector<2x8x8xf32>
    %84 = tpu.matmul %79, %81, %cst_32 {dimension_numbers = #tpu.dot_dimension_numbers<[2], [2], [1], [1], [0, 0, 0, 1, 1, 1], [0], [0]>, precision = #tpu.contract_precision<fp32>} : vector<2x8x8xf32>, vector<2x8x8xf32>, vector<2x8x8xf32> -> vector<2x8x8xf32>
    "tpu.trace_stop"() : () -> ()
    %cst_33 = arith.constant dense<0xFF800000> : vector<2x8xf32>
    %85 = vector.multi_reduction <maximumf>, %84, %cst_33 [2] : vector<2x8x8xf32> to vector<2x8xf32>
    %86 = vector.shape_cast %85 : vector<2x8xf32> to vector<2x8x1xf32>
    %87 = vector.broadcast %86 : vector<2x8x1xf32> to vector<2x8x8xf32>
    %88 = arith.subf %84, %87 : vector<2x8x8xf32>
    %89 = math.exp %88 : vector<2x8x8xf32>
    %cst_34 = arith.constant dense<0.000000e+00> : vector<2x8xf32>
    %90 = vector.multi_reduction <add>, %89, %cst_34 [2] : vector<2x8x8xf32> to vector<2x8xf32>
    %91 = vector.shape_cast %90 : vector<2x8xf32> to vector<2x8x1xf32>
    %92 = vector.broadcast %91 : vector<2x8x1xf32> to vector<2x8x8xf32>
    %93 = arith.divf %89, %92 : vector<2x8x8xf32>
    %c0_35 = arith.constant 0 : index
    %c3 = arith.constant 3 : index
    %c0_36 = arith.constant 0 : index
    %c0_37 = arith.constant 0 : index
    %94 = vector.load %arg5[%c0_35, %c3, %c0_36, %c0_37] : memref<2x4x8x8xf32, #tpu.memory_space<vmem>>, vector<2x1x8x8xf32>
    %95 = vector.shape_cast %94 : vector<2x1x8x8xf32> to vector<2x8x8xf32>
    %96 = vector.shape_cast %93 : vector<2x8x8xf32> to vector<2x1x8x8xf32>
    tpu.vector_store %arg5[%c0_35, %c3, %c0_36, %c0_37], %96 {strides = array<i32>} : memref<2x4x8x8xf32, #tpu.memory_space<vmem>>, vector<2x1x8x8xf32>,
    "tpu.trace_start"() <{level = 10 : i32, message = "bqk,bkd->bqd"}> : () -> ()
    %cst_38 = arith.constant dense<0.000000e+00> : vector<2x8x8xf32>
    %97 = tpu.matmul %93, %83, %cst_38 {dimension_numbers = #tpu.dot_dimension_numbers<[2], [1], [1], [2], [0, 0, 0, 1, 1, 2], [0], [0]>, precision = #tpu.contract_precision<fp32>} : vector<2x8x8xf32>, vector<2x8x8xf32>, vector<2x8x8xf32> -> vector<2x8x8xf32>
    "tpu.trace_stop"() : () -> ()
    %98 = vector.shape_cast %97 : vector<2x8x8xf32> to vector<16x8xf32>
    %99 = vector.extract_strided_slice %4 {offsets = [24, 0], sizes = [8, 32], strides = [1, 1]} : vector<32x32xf32> to vector<8x32xf32>
    %cst_39 = arith.constant dense<0.000000e+00> : vector<16x32xf32>
    %100 = tpu.matmul %98, %99, %cst_39 {dimension_numbers = #tpu.dot_dimension_numbers<[1], [0], [0], [1], [0, 0, 1, 1], [], []>, precision = #tpu.contract_precision<fp32>} : vector<16x8xf32>, vector<8x32xf32>, vector<16x32xf32> -> vector<16x32xf32>
    %101 = arith.addf %77, %100 : vector<16x32xf32>
    %c0_40 = arith.constant 0 : index
    %c0_41 = arith.constant 0 : index
    %102 = vector.load %arg3[%c0_40, %c0_41] : memref<1x32xf32, #tpu.memory_space<vmem>>, vector<1x32xf32>
    %103 = vector.broadcast %102 : vector<1x32xf32> to vector<16x32xf32>
    %104 = arith.addf %101, %103 : vector<16x32xf32>
    %c0_42 = arith.constant 0 : index
    %c0_43 = arith.constant 0 : index
    %105 = vector.load %arg4[%c0_42, %c0_43] : memref<16x32xf32, #tpu.memory_space<vmem>>, vector<16x32xf32>
    tpu.vector_store %arg4[%c0_42, %c0_43], %104 {strides = array<i32>} : memref<16x32xf32, #tpu.memory_space<vmem>>, vector<16x32xf32>,
    return
  }
}

</mosaic_0001>

<bundles_post_ra>
// kernel: tpu_custom_call.1
= control target key start
LH: loop header
LB: loop body
LE: loop exit
PB: predicated region body
PF: predicated region fallthrough
CT: control target
= control target key end

     0   :  { %11 = vsyncpa [#allocation3], 0  ;;  %s12001_s0 = inlined_call_operand.hbm [shape: f32[2,8,32], index: 0, kind: input, shape index: {}]   ;;  %s12002_s1 = inlined_call_operand.hbm [shape: f32[32,96], index: 1, kind: input, shape index: {}]   ;;  %s12003_s2 = inlined_call_operand.hbm [shape: f32[32,32], index: 2, kind: input, shape index: {}]   ;;  %s12004_s3 = inlined_call_operand.vmem [shape: f32[1,32], index: 3, kind: input, shape index: {}]   ;;  %s12005_s4 = inlined_call_operand.hbm [shape: f32[16,32], index: 4, kind: output, shape index: {0}]   ;;  %s12006_s5 = inlined_call_operand.hbm [shape: f32[2,4,8,8], index: 5, kind: output, shape index: {1}]  }
   0x1   :  { %12 = vsyncpa [#allocation6], 0 }
   0x2   :  { %13 = vsyncpa [#allocation4], 0 }
   0x3   :  { %14 = vsyncpa [#allocation10], 0  ;;  %s11383_s18 = smov [#allocation5]   ;;  %s11384_s20 = smov [#allocation2]  }
   0x4   :  { %s32_s19 = sshll.u32 %s11383_s18, 4  ;;  %s20_s21 = sshll.u32 %s11384_s20, 4  ;;  %s33_s19 = int_to_ptr.vmem [resolvable:$true] %s32_s19  ;;  %s11433_s21 = int_to_ptr.vmem [resolvable:$true] %s20_s21 }
   0x5   :  { %s11265_s24 = scalar_lea.hbm %s12002_s1, 512 }
   0x6   :  { %p11266_p0 = scmp.ne.s32.totalorder %s12002_s1, %s11265_s24  ;;  %p11269_p1 = scmp.lt.u32.totalorder %s11265_s24, %s12002_s1 }
   0x8   :  { %p11271_p2 = pnand %p11269_p1, %p11266_p0 }
   0xa   :  { %11274 = shalt.err (!%p11271_p2)
}
   0xb   :  { %s11275_s29 = scalar_lea.vmem %s33_s19, 512  ;;  %p11280_p4 = scmp.lt.s32.totalorder %s33_s19, %s33_s19 }
   0xc   :  { %p11276_p3 = scmp.ne.s32.totalorder %s33_s19, %s11275_s29  ;;  %p11281_p5 = scmp.lt.s32.totalorder %s11275_s29, %s11275_s29 }
   0xe   :  { %p11282_p6 = por %p11281_p5, %p11280_p4 }
  0x10   :  { %p11283_p7 = pnand %p11282_p6, %p11276_p3 }
  0x12   :  { %11286 = shalt.err (!%p11283_p7)
}
  0x13   :  { %s11385_s30 = smov 128   ;;  %s11386_s6 = smov 8  }
  0x14   :  { %38 = dma.hbm_to_vmem [thread:$0]  %s12002_s1, 512, %s33_s19, [#allocation6], %s11385_s30, %s11385_s30, %s11386_s6  }
  0x15   :  { %s11287_s11 = scalar_lea.hbm %s12001_s0, 256 }
  0x16   :  { %p11288_p8 = scmp.ne.s32.totalorder %s12001_s0, %s11287_s11  ;;  %p11291_p9 = scmp.lt.u32.totalorder %s11287_s11, %s12001_s0 }
  0x18   :  { %p11293_p10 = pnand %p11291_p9, %p11288_p8 }
  0x1a   :  { %11296 = shalt.err (!%p11293_p10)
}
  0x1b   :  { %s11297_s16 = scalar_lea.vmem %s11433_s21, 256  ;;  %p11302_p12 = scmp.lt.s32.totalorder %s11433_s21, %s11433_s21 }
  0x1c   :  { %p11298_p11 = scmp.ne.s32.totalorder %s11433_s21, %s11297_s16  ;;  %p11303_p13 = scmp.lt.s32.totalorder %s11297_s16, %s11297_s16 }
  0x1e   :  { %p11304_p0 = por %p11303_p13, %p11302_p12 }
  0x20   :  { %p11305_p1 = pnand %p11304_p0, %p11298_p11 }
  0x22   :  { %11308 = shalt.err (!%p11305_p1)
}
  0x23   :  { %26 = dma.hbm_to_vmem [thread:$0]  %s12001_s0, 256, %s11433_s21, [#allocation3], %s11385_s30, %s11385_s30, %s11386_s6  }
  0x24   :  { %s11387_s18 = smov [#allocation7]   ;;  %s11309_s23 = scalar_lea.hbm %s12003_s2, 512 }
  0x25   :  { %s44_s19 = sshll.u32 %s11387_s18, 4  ;;  %p11310_p2 = scmp.ne.s32.totalorder %s12003_s2, %s11309_s23  ;;  %s45_s19 = int_to_ptr.vmem [resolvable:$true] %s44_s19 }
  0x26   :  { %p11313_p3 = scmp.lt.u32.totalorder %s11309_s23, %s12003_s2 }
  0x28   :  { %p11315_p4 = pnand %p11313_p3, %p11310_p2 }
  0x2a   :  { %11318 = shalt.err (!%p11315_p4)
}
  0x2b   :  { %s11319_s28 = scalar_lea.vmem %s45_s19, 512  ;;  %p11324_p6 = scmp.lt.s32.totalorder %s45_s19, %s45_s19 }
  0x2c   :  { %p11320_p5 = scmp.ne.s32.totalorder %s45_s19, %s11319_s28  ;;  %p11325_p7 = scmp.lt.s32.totalorder %s11319_s28, %s11319_s28 }
  0x2e   :  { %p11326_p8 = por %p11325_p7, %p11324_p6 }
  0x30   :  { %p11327_p9 = pnand %p11326_p8, %p11320_p5 }
  0x32   :  { %11330 = shalt.err (!%p11327_p9)
}
  0x33   :  { %50 = dma.hbm_to_vmem [thread:$0]  %s12003_s2, 512, %s45_s19, [#allocation6], %s11385_s30, %s11385_s30, %s11386_s6  }
  0x34   :  { %11375 = dma.done.wait [#allocation3], 256  }
  0x35   :  { %11376 = vsyncadd [#allocation3], 4294967040 }
  0x36   :  { %11377 = dma.done.wait [#allocation6], 1024  }
  0x37   :  { %11378 = vsyncadd [#allocation6], 4294966272  ;;  %vm68_vm0 = vcmask 261120   ;;  %v64_v0 = vld [vmem:[#allocation5] sm:$0xff]  ;;  %v65_v1 = vld [vmem:[#allocation5 + $0x8] sm:$0xff]  ;;  %v11388_v46 = vmov 0.0  }
  0x38   :  { %v66_v2 = vld [vmem:[#allocation5 + $0x10] sm:$0xff]  ;;  %v76_v3 = vand.u32 4294901760, %v64_v0  ;;  %v79_v4 = vand.u32 4294901760, %v65_v1  ;;  %v67_v5 = vld [vmem:[#allocation5 + $0x18] sm:$0xff]  ;;  %vm11389_vm1 = vmmov 0   ;;  %s11390_s2 = smov 96  }
  0x39   :  { %v82_v6 = vand.u32 4294901760, %v66_v2  ;;  %v62_v7 = vld [vmem:[#allocation2] sm:$0xff]  ;;  %v63_v8 = vld [vmem:[#allocation2 + $0x8] sm:$0xff]  ;;  %v85_v9 = vand.u32 4294901760, %v67_v5  ;;  %s11391_s29 = smov 64   ;;  %s11392_s7 = smov 88  }
  0x3a   :  { %v70_v10 = vsel %vm68_vm0, %v62_v7, 0  ;;  %v73_v11 = vsel %vm68_vm0, %v63_v8, 0  ;;  %v10949_v12 = vpack.c.bf16 %v79_v4, %v76_v3  ;;  %v166_v15 = vsub.f32 %v64_v0, %v76_v3  ;;  %s11393_s8 = smov 120   ;;  %s11394_s9 = smov 56  }
  0x3b   :  { %v11487_v13 = vand.u32 4294901760, %v70_v10  ;;  %v11489_v14 = vand.u32 4294901760, %v73_v11  ;;  %v10953_v16 = vpack.c.bf16 %v85_v9, %v82_v6  ;;  %v173_v17 = vsub.f32 %v65_v1, %v79_v4  ;;  %s11395_s10 = smov 80   ;;  %s11396_s11 = smov 112  }
  0x3c   :  { %v180_v18 = vsub.f32 %v66_v2, %v82_v6  ;;  %v187_v19 = vsub.f32 %v67_v5, %v85_v9  ;;  %10950 = vmatprep.subr.bf16.mxu1 %v10949_v12  ;;  %10974 = vmatprep.subr.bf16.mxu0 %v10949_v12  ;;  %v167_v22 = vand.u32 4294901760, %v166_v15  ;;  %vm610_vm2 = vcmask 64512   ;;  %s11397_s12 = smov 48   ;;  %s11398_s13 = smov 72  }
  0x3d   :  { %v145_v20 = vsub.f32 %v70_v10, %v11487_v13  ;;  %v155_v21 = vsub.f32 %v73_v11, %v11489_v14  ;;  %10952 = vmatpush3.bf16.msra.mxu1 %v10949_v12  ;;  %10976 = vmatpush3.bf16.msra.mxu0 %v10949_v12  ;;  %v174_v23 = vand.u32 4294901760, %v173_v17  ;;  %v10965_v44 = vpack.c.bf16 %v173_v17, %v166_v15  ;;  %s11399_s14 = smov 104   ;;  %s11400_s15 = smov 40  }
  0x3e   :  { %v181_v24 = vand.u32 4294901760, %v180_v18  ;;  %v188_v25 = vand.u32 4294901760, %v187_v19  ;;  %10954 = vmatprep.subr.bf16.mxu1 %v10953_v16  ;;  %10978 = vmatprep.subr.bf16.mxu0 %v10953_v16  ;;  %v168_v28 = vsub.f32 %v166_v15, %v167_v22  ;;  %v10969_v45 = vpack.c.bf16 %v187_v19, %v180_v18  ;;  %s11401_s16 = smov [#allocation9]  }
  0x3f   :  { %v146_v26 = vand.u32 4294901760, %v145_v20  ;;  %v156_v27 = vand.u32 4294901760, %v155_v21  ;;  %v175_v29 = vsub.f32 %v173_v17, %v174_v23  ;;  %v10981_v30 = vpack.c.bf16 %v174_v23, %v167_v22  ;;  %s9965_s1 = sshll.u32 %s11401_s16, 4  ;;  %s9966_s1 = int_to_ptr.vmem [resolvable:$true] %s9965_s1 }
  0x40   :  { %v182_v31 = vsub.f32 %v180_v18, %v181_v24  ;;  %v189_v32 = vsub.f32 %v187_v19, %v188_v25  ;;  %v169_v35 = vand.u32 4294901760, %v168_v28  ;;  %v10985_v43 = vpack.c.bf16 %v188_v25, %v181_v24  ;;  %s11331_s17 = scalar_lea.vmem %s9966_s1, 1024  ;;  %p11336_p11 = scmp.lt.s32.totalorder %s9966_s1, %s9966_s1 }
  0x41   :  { %v147_v33 = vsub.f32 %v145_v20, %v146_v26  ;;  %10324 = vmatprep.mubr.f32.mxu0 %v146_v26  ;;  %v157_v34 = vsub.f32 %v155_v21, %v156_v27  ;;  %10956 = vmatpush3.bf16.msra.mxu1 %v10953_v16  ;;  %v176_v36 = vand.u32 4294901760, %v175_v29  ;;  %p11332_p10 = scmp.ne.s32.totalorder %s9966_s1, %s11331_s17  ;;  %p11337_p12 = scmp.lt.s32.totalorder %s11331_s17, %s11331_s17 }
  0x42   :  { %10980 = vmatpush3.bf16.msra.mxu0 %v10953_v16  ;;  %v183_v37 = vand.u32 4294901760, %v182_v31  ;;  %v190_v38 = vand.u32 4294901760, %v189_v32 }
  0x43   :  { %v148_v39 = vand.u32 4294901760, %v147_v33  ;;  %v158_v40 = vand.u32 4294901760, %v157_v34  ;;  %10982 = vmatprep.subr.bf16.mxu0 %v10981_v30  ;;  %v10957_v41 = vpack.c.bf16 %v176_v36, %v169_v35  ;;  %p11338_p13 = por %p11337_p12, %p11336_p11 }
  0x44   :  { %v10961_v42 = vpack.c.bf16 %v190_v38, %v183_v37 }
  0x45   :  { %10291 = vmatprep.mubr.f32.mxu1 %v148_v39  ;;  %10325 = vmatmul.mubr.f32.vlgmr.msra.gmra.mrb[0].mxu0 %v156_v27  ;;  %p11339_p0 = pnand %p11338_p13, %p11332_p10 }
  0x46   :  { %10292 = vmatmul.mubr.f32.vlgmr.msra.gmra.mrb[0].mxu1 %v158_v40  ;;  %10958 = vmatprep.subr.bf16.mxu1 %v10957_v41 }
  0x47   :  { %10960 = vmatpush3.bf16.msra.mxu1 %v10957_v41  ;;  %10984 = vmatpush3.bf16.msra.mxu0 %v10981_v30 }
  0x48   :  { %10962 = vmatprep.subr.bf16.mxu1 %v10961_v42  ;;  %10986 = vmatprep.subr.bf16.mxu0 %v10985_v43 }
  0x49   :  { %10302 = vmatprep.mubr.f32.mxu1 %v11487_v13  ;;  %10335 = vmatprep.mubr.f32.mxu0 %v11487_v13 }
  0x4b   :  { %10964 = vmatpush3.bf16.msra.mxu1 %v10961_v42  ;;  %10988 = vmatpush3.bf16.msra.mxu0 %v10985_v43 }
  0x4c   :  { %10966 = vmatprep.subr.bf16.mxu1 %v10965_v44  ;;  %10990 = vmatprep.subr.bf16.mxu0 %v10949_v12 }
  0x4e   :  { %10303 = vmatmul.mubr.f32.vlgmr.msra.gmra.mrb[0].mxu1 %v11489_v14  ;;  %10336 = vmatmul.mubr.f32.vlgmr.msra.gmra.mrb[0].mxu0 %v11489_v14 }
  0x4f   :  { %10968 = vmatpush3.bf16.msra.mxu1 %v10965_v44  ;;  %10992 = vmatpush3.bf16.msra.mxu0 %v10949_v12 }
  0x50   :  { %10970 = vmatprep.subr.bf16.mxu1 %v10969_v45  ;;  %10994 = vmatprep.subr.bf16.mxu0 %v10953_v16 }
  0x51   :  { %10313 = vmatprep.mubr.f32.mxu1 %v145_v20  ;;  %10346 = vmatprep.mubr.f32.mxu0 %v11487_v13 }
  0x53   :  { %10972 = vmatpush3.bf16.msra.mxu1 %v10969_v45  ;;  %10996 = vmatpush3.bf16.msra.mxu0 %v10953_v16 }
  0x54   :  { %10349 = vmatprep.subr.mxu1 %v11388_v46  ;;  %10409 = vmatprep.subr.mxu0 %v11388_v46 }
  0x56   :  { %10314 = vmatmul.mubr.f32.vlgmr.msra.gmra.mrb[0].mxu1 %v155_v21  ;;  %10347 = vmatmul.mubr.f32.vlgmr.msra.gmra.mrb[0].mxu0 %v11489_v14 }
  0x57   :  { %10351 = vmatprep.mubr.msk.f32.mxu1 %vm11389_vm1, %v11388_v46  ;;  %10411 = vmatprep.mubr.msk.f32.mxu0 %vm11389_vm1, %v11388_v46 }
 0x129   :  { %v10315_v47 = vpop.f32.mrb[0].mxu1  ;;  %v10348_v48 = vpop.f32.mrb[0].mxu0 }
 0x12a   :  { %v11505_v49 = vadd.f32 %v10348_v48, %v10315_v47  ;;  %v337_v50 = vpop.f32.mrb[1].mxu1  ;;  %v593_v51 = vpop.f32.mrb[1].mxu0 }
 0x12b   :  { %v11507_v52 = vadd.f32 %v593_v51, %v337_v50 }
 0x12c   :  { %v1064_v3 = vsel %vm610_vm2, %v11505_v49, 0 }
 0x12d   :  { %608 = vrot.lane.b32.xlu0 %v11507_v52, %s11390_s2  ;;  %v611_v53 = vsel %vm610_vm2, %v11507_v52, 0  ;;  %v1134_v5 = vand.u32 4294901760, %v1064_v3 }
 0x12e   :  { %v681_v54 = vand.u32 4294901760, %v611_v53 }
 0x12f   :  { %v1135_v7 = vsub.f32 %v1064_v3, %v1134_v5 }
 0x130   :  { %v682_v55 = vsub.f32 %v611_v53, %v681_v54 }
 0x131   :  { %1062 = vrot.lane.b32.xlu0 %v11505_v49, %s11390_s2  ;;  %v1136_v9 = vand.u32 4294901760, %v1135_v7 }
 0x132   :  { %v683_v56 = vand.u32 4294901760, %v682_v55 }
 0x133   :  { %v1137_v11 = vsub.f32 %v1135_v7, %v1136_v9 }
 0x134   :  { %v684_v59 = vsub.f32 %v682_v55, %v683_v56 }
 0x135   :  { %1990 = vrot.lane.b32.xlu0 %v11505_v49, %s11391_s29  ;;  %v1138_v13 = vand.u32 4294901760, %v1137_v11 }
 0x136   :  { %v685_v62 = vand.u32 4294901760, %v684_v59 }
 0x139   :  { %2898 = vrot.lane.b32.xlu0 %v11505_v49, %s11392_s7 }
 0x19f   :  { %v609_v57 = vpop.permute.xlu0 %608 }
 0x1a0   :  { %v613_v58 = vsel %vm610_vm2, %v609_v57, 0 }
 0x1a1   :  { %v616_v60 = vand.u32 4294901760, %v613_v58 }
 0x1a3   :  { %v693_v61 = vsub.f32 %v613_v58, %v616_v60  ;;  %10350 = vmatpush3.xpose.msra.mxu1 %v616_v60  ;;  %v1063_v2 = vpop.permute.xlu0 %1062 }
 0x1a4   :  { %10354 = vmatprep.subr.mxu1 %v11388_v46  ;;  %v1066_v4 = vsel %vm610_vm2, %v1063_v2, 0 }
 0x1a5   :  { %v694_v63 = vand.u32 4294901760, %v693_v61  ;;  %v1069_v6 = vand.u32 4294901760, %v1066_v4 }
 0x1a6   :  { %10352 = vmatmul.mubr.f32.vlgmr.msra.gmra.mrb[2].mxu1 %v685_v62 }
 0x1a7   :  { %v695_v0 = vsub.f32 %v693_v61, %v694_v63  ;;  %10356 = vmatprep.mubr.msk.f32.mxu1 %vm11389_vm1, %v11388_v46  ;;  %v1146_v8 = vsub.f32 %v1066_v4, %v1069_v6  ;;  %v1991_v15 = vpop.permute.xlu0 %1990 }
 0x1a8   :  { %v11555_v16 = vand.u32 4294901760, %v1991_v15 }
 0x1a9   :  { %v696_v1 = vand.u32 4294901760, %v695_v0  ;;  %v1147_v10 = vand.u32 4294901760, %v1146_v8 }
 0x1aa   :  { %v2074_v38 = vsub.f32 %v1991_v15, %v11555_v16 }
 0x1ab   :  { %10355 = vmatpush3.xpose.msra.mxu1 %v696_v1  ;;  %v1148_v12 = vsub.f32 %v1146_v8, %v1147_v10  ;;  %v2899_v23 = vpop.permute.xlu0 %2898 }
 0x1ac   :  { %10359 = vmatprep.subr.mxu1 %v11388_v46  ;;  %v2075_v42 = vand.u32 4294901760, %v2074_v38 }
 0x1ad   :  { %v1149_v14 = vand.u32 4294901760, %v1148_v12 }
 0x1ae   :  { %10357 = vmatmul.mubr.f32.vlgmr.msra.gmra.mrb[2].mxu1 %v681_v54  ;;  %v2076_v45 = vsub.f32 %v2074_v38, %v2075_v42 }
 0x1af   :  { %10360 = vmatpush3.xpose.msra.mxu1 %v693_v61  ;;  %10361 = vmatprep.mubr.msk.f32.mxu1 %vm11389_vm1, %v11388_v46 }
 0x1b0   :  { %10364 = vmatprep.subr.mxu1 %v11388_v46  ;;  %v2077_v50 = vand.u32 4294901760, %v2076_v45 }
 0x1b6   :  { %10362 = vmatmul.mubr.f32.vlgmr.msra.gmra.mrb[2].mxu1 %v682_v55 }
 0x1b7   :  { %10365 = vmatpush3.xpose.msra.mxu1 %v616_v60  ;;  %10366 = vmatprep.mubr.msk.f32.mxu1 %vm11389_vm1, %v11388_v46 }
 0x1b8   :  { %10369 = vmatprep.subr.mxu1 %v11388_v46 }
 0x1be   :  { %10367 = vmatmul.mubr.f32.vlgmr.msra.gmra.mrb[2].mxu1 %v683_v56 }
 0x1bf   :  { %10370 = vmatpush3.xpose.msra.mxu1 %v694_v63  ;;  %10371 = vmatprep.mubr.msk.f32.mxu1 %vm11389_vm1, %v11388_v46 }
 0x1c0   :  { %10374 = vmatprep.subr.mxu1 %v11388_v46 }
 0x1c6   :  { %10372 = vmatmul.mubr.f32.vlgmr.msra.gmra.mrb[2].mxu1 %v681_v54 }
 0x1c7   :  { %10375 = vmatpush3.xpose.msra.mxu1 %v616_v60  ;;  %10376 = vmatprep.mubr.msk.f32.mxu1 %vm11389_vm1, %v11388_v46 }
 0x1c8   :  { %10379 = vmatprep.subr.mxu1 %v11388_v46 }
 0x1ce   :  { %10377 = vmatmul.mubr.f32.vlgmr.msra.gmra.mrb[2].mxu1 %v681_v54  ;;  %v2902_v54 = vsel %vm610_vm2, %v2899_v23, 0 }
 0x1cf   :  { %10380 = vmatpush3.xpose.msra.mxu1 %v1069_v6  ;;  %10381 = vmatprep.mubr.msk.f32.mxu1 %vm11389_vm1, %v11388_v46  ;;  %v11598_v56 = vand.u32 4294901760, %v2902_v54 }
 0x1d0   :  { %10384 = vmatprep.subr.mxu1 %v11388_v46 }
 0x1d1   :  { %v2982_v59 = vsub.f32 %v2902_v54, %v11598_v56 }
 0x1d2   :  { %10382 = vmatmul.mubr.f32.vlgmr.msra.gmra.mrb[4].mxu1 %v1138_v13 }
 0x1d3   :  { %10385 = vmatpush3.xpose.msra.mxu1 %v1149_v14  ;;  %10386 = vmatprep.mubr.msk.f32.mxu1 %vm11389_vm1, %v11388_v46  ;;  %v2983_v61 = vand.u32 4294901760, %v2982_v59 }
 0x1d4   :  { %10389 = vmatprep.subr.mxu1 %v11388_v46 }
 0x1d5   :  { %v2984_v0 = vsub.f32 %v2982_v59, %v2983_v61 }
 0x1da   :  { %10387 = vmatmul.mubr.f32.vlgmr.msra.gmra.mrb[4].mxu1 %v1134_v5 }
 0x1db   :  { %10390 = vmatpush3.xpose.msra.mxu1 %v1146_v8  ;;  %10391 = vmatprep.mubr.msk.f32.mxu1 %vm11389_vm1, %v11388_v46 }
 0x1dc   :  { %10394 = vmatprep.subr.mxu1 %v11388_v46 }
 0x1e2   :  { %10392 = vmatmul.mubr.f32.vlgmr.msra.gmra.mrb[4].mxu1 %v1135_v7 }
 0x1e3   :  { %10395 = vmatpush3.xpose.msra.mxu1 %v1069_v6  ;;  %10396 = vmatprep.mubr.msk.f32.mxu1 %vm11389_vm1, %v11388_v46 }
 0x1e4   :  { %10399 = vmatprep.subr.mxu1 %v11388_v46 }
 0x1ea   :  { %10397 = vmatmul.mubr.f32.vlgmr.msra.gmra.mrb[4].mxu1 %v1136_v9 }
 0x1eb   :  { %10400 = vmatpush3.xpose.msra.mxu1 %v1147_v10  ;;  %10401 = vmatprep.mubr.msk.f32.mxu1 %vm11389_vm1, %v11388_v46 }
 0x1ec   :  { %10404 = vmatprep.subr.mxu1 %v11388_v46 }
 0x1f2   :  { %10402 = vmatmul.mubr.f32.vlgmr.msra.gmra.mrb[4].mxu1 %v1134_v5 }
 0x1f3   :  { %10405 = vmatpush3.xpose.msra.mxu1 %v1069_v6  ;;  %10406 = vmatprep.mubr.msk.f32.mxu1 %vm11389_vm1, %v11388_v46 }
 0x1f4   :  { %10439 = vmatprep.subr.mxu1 %v11388_v46 }
 0x1fa   :  { %10407 = vmatmul.mubr.f32.vlgmr.msra.gmra.mrb[4].mxu1 %v1134_v5  ;;  %v2985_v5 = vand.u32 4294901760, %v2984_v0 }
 0x1fb   :  { %10440 = vmatpush3.msra.mxu1 %v11555_v16  ;;  %10441 = vmatprep.mubr.msk.f32.mxu1 %vm11389_vm1, %v11388_v46 }
 0x1fc   :  { %10444 = vmatprep.subr.mxu1 %v11388_v46 }
 0x2a1   :  { %v1057_v17 = vpop.f32.mrb[2].mxu1 }
 0x2a2   :  { %v10378_v18 = vpop.f32.mrb[3].mxu1  ;;  %v1514_v19 = vsel %vm610_vm2, %v1057_v17, -inf }
 0x2a3   :  { %1515 = vmax.xlane.f32.xlu0 %v1514_v19 }
 0x2b9   :  { %1538 = vrot.lane.b32.xlu0 %v11507_v52, %s11391_s29 }
 0x2bd   :  { %2444 = vrot.lane.b32.xlu0 %v11507_v52, %s11392_s7 }
 0x2cd   :  { %v1510_v20 = vpop.f32.mrb[4].mxu1 }
 0x2ce   :  { %v10408_v21 = vpop.f32.mrb[5].mxu1  ;;  %v1517_v22 = vsel %vm610_vm2, %v1510_v20, -inf }
 0x2cf   :  { %1518 = vmax.xlane.f32.xlu1 %v1517_v22 }
 0x330   :  { %v1516_v24 = vpop.xlane.xlu0 %1515 }
 0x331   :  { %v1520_v25 = vsub.f32 %v1057_v17, %v1516_v24 }
 0x333   :  { %v1522_v33 = vmul.f32 1.442695, %v1520_v25 }
 0x334   :  { %v11567_v26 = vpop.permute.xlu0 %1538 }
 0x335   :  { %v11570_v27 = vand.u32 4294901760, %v11567_v26 }
 0x337   :  { %10410 = vmatpush3.msra.mxu0 %v11570_v27  ;;  %v1622_v1 = vsub.f32 %v11567_v26, %v11570_v27 }
 0x338   :  { %10414 = vmatprep.subr.mxu0 %v11388_v46  ;;  %v2445_v15 = vpop.permute.xlu0 %2444 }
 0x339   :  { %v1623_v7 = vand.u32 4294901760, %v1622_v1  ;;  %v2448_v17 = vsel %vm610_vm2, %v2445_v15, 0 }
 0x33a   :  { %v2451_v19 = vand.u32 4294901760, %v2448_v17 }
 0x33b   :  { %v1624_v10 = vsub.f32 %v1622_v1, %v1623_v7 }
 0x33c   :  { %v2528_v21 = vsub.f32 %v2448_v17, %v2451_v19 }
 0x33d   :  { %v1625_v13 = vand.u32 4294901760, %v1624_v10 }
 0x33e   :  { %v2529_v23 = vand.u32 4294901760, %v2528_v21 }
 0x340   :  { %v2530_v25 = vsub.f32 %v2528_v21, %v2529_v23 }
 0x35c   :  { %v1519_v28 = vpop.xlane.xlu1 %1518 }
 0x35d   :  { %v1521_v29 = vsub.f32 %v1510_v20, %v1519_v28  ;;  %v2531_v28 = vand.u32 4294901760, %v2530_v25 }
 0x35f   :  { %v1524_v30 = vmul.f32 1.442695, %v1521_v29 }
 0x361   :  { %11233 = vpow2.f32 %v1524_v30 }
 0x362   :  { %11235 = vpow2.f32 %v1522_v33 }
 0x36b   :  { %v11234_v31 = vpop.eup %11233 }
 0x36c   :  { %v1529_v32 = vsel %vm610_vm2, %v11234_v31, 0.0  ;;  %v11236_v34 = vpop.eup %11235 }
 0x36d   :  { %1530 = vadd.xlane.f32.xlu1 %v1529_v32  ;;  %v1526_v35 = vsel %vm610_vm2, %v11236_v34, 0.0 }
 0x37e   :  { %2896 = vrot.lane.b32.xlu1 %v11505_v49, %s11393_s8 }
 0x3a2   :  { %1527 = vadd.xlane.f32.xlu1 %v1526_v35 }
 0x3b3   :  { %2442 = vrot.lane.b32.xlu1 %v11507_v52, %s11393_s8 }
 0x3fa   :  { %v1531_v36 = vpop.xlane.xlu1 %1530 }
 0x3fb   :  { %11237 = vrcp.f32 %v1531_v36 }
 0x3fe   :  { %v2897_v51 = vpop.permute.xlu1 %2896 }
 0x3ff   :  { %v2900_v53 = vsel %vm610_vm2, %v2897_v51, 0 }
 0x400   :  { %v11595_v55 = vand.u32 4294901760, %v2900_v53 }
 0x402   :  { %v2971_v58 = vsub.f32 %v2900_v53, %v11595_v55 }
 0x404   :  { %v2972_v60 = vand.u32 4294901760, %v2971_v58 }
 0x405   :  { %v11238_v37 = vpop.eup %11237 }
 0x406   :  { %v1535_v39 = vmul.f32 %v11238_v37, %v11234_v31  ;;  %v2973_v62 = vsub.f32 %v2971_v58, %v2972_v60 }
 0x408   :  { %1537 = vst.msk [vmem:[#allocation9 + $0x20] sm:$0xff] %vm610_vm2, %v1535_v39  ;;  %v1994_v40 = vsel %vm610_vm2, %v1535_v39, 0  ;;  %v2974_v3 = vand.u32 4294901760, %v2973_v62 }
 0x409   :  { %v2062_v41 = vand.u32 4294901760, %v1994_v40 }
 0x40b   :  { %v2063_v43 = vsub.f32 %v1994_v40, %v2062_v41 }
 0x40d   :  { %v2064_v44 = vand.u32 4294901760, %v2063_v43 }
 0x40f   :  { %v2065_v47 = vsub.f32 %v2063_v43, %v2064_v44 }
 0x411   :  { %v2066_v48 = vand.u32 4294901760, %v2065_v47 }
 0x413   :  { %10442 = vmatmul.mubr.f32.vlgmr.msra.gmra.mrb[6].mxu1 %v2066_v48 }
 0x414   :  { %10445 = vmatpush3.msra.mxu1 %v2077_v50  ;;  %10446 = vmatprep.mubr.msk.f32.mxu1 %vm11389_vm1, %v11388_v46 }
 0x415   :  { %10449 = vmatprep.subr.mxu1 %v11388_v46 }
 0x41b   :  { %10447 = vmatmul.mubr.f32.vlgmr.msra.gmra.mrb[6].mxu1 %v2062_v41 }
 0x41c   :  { %10450 = vmatpush3.msra.mxu1 %v2074_v38  ;;  %10451 = vmatprep.mubr.msk.f32.mxu1 %vm11389_vm1, %v11388_v46 }
 0x41d   :  { %10454 = vmatprep.subr.mxu1 %v11388_v46 }
 0x423   :  { %10452 = vmatmul.mubr.f32.vlgmr.msra.gmra.mrb[6].mxu1 %v2063_v43 }
 0x424   :  { %10455 = vmatpush3.msra.mxu1 %v11555_v16  ;;  %10456 = vmatprep.mubr.msk.f32.mxu1 %vm11389_vm1, %v11388_v46 }
 0x425   :  { %10459 = vmatprep.subr.mxu1 %v11388_v46 }
 0x42b   :  { %10457 = vmatmul.mubr.f32.vlgmr.msra.gmra.mrb[6].mxu1 %v2064_v44 }
 0x42c   :  { %10460 = vmatpush3.msra.mxu1 %v2075_v42  ;;  %10461 = vmatprep.mubr.msk.f32.mxu1 %vm11389_vm1, %v11388_v46 }
 0x42d   :  { %10464 = vmatprep.subr.mxu1 %v11388_v46 }
 0x42f   :  { %v1528_v57 = vpop.xlane.xlu1 %1527 }
 0x430   :  { %11239 = vrcp.f32 %v1528_v57 }
 0x433   :  { %10462 = vmatmul.mubr.f32.vlgmr.msra.gmra.mrb[6].mxu1 %v2062_v41  ;;  %v2443_v14 = vpop.permute.xlu1 %2442 }
 0x434   :  { %10465 = vmatpush3.msra.mxu1 %v11555_v16  ;;  %10466 = vmatprep.mubr.msk.f32.mxu1 %vm11389_vm1, %v11388_v46  ;;  %v2446_v16 = vsel %vm610_vm2, %v2443_v14, 0 }
 0x435   :  { %10499 = vmatprep.subr.mxu1 %v11388_v46  ;;  %v2516_v18 = vand.u32 4294901760, %v2446_v16 }
 0x437   :  { %v2517_v20 = vsub.f32 %v2446_v16, %v2516_v18 }
 0x439   :  { %v2518_v22 = vand.u32 4294901760, %v2517_v20 }
 0x43a   :  { %v11240_v63 = vpop.eup %11239 }
 0x43b   :  { %v1533_v2 = vmul.f32 %v11240_v63, %v11236_v34  ;;  %10467 = vmatmul.mubr.f32.vlgmr.msra.gmra.mrb[6].mxu1 %v2062_v41  ;;  %v2519_v24 = vsub.f32 %v2517_v20, %v2518_v22 }
 0x43c   :  { %10500 = vmatpush3.xpose.msra.mxu1 %v11598_v56  ;;  %10501 = vmatprep.mubr.msk.f32.mxu1 %vm11389_vm1, %v11388_v46 }
 0x43d   :  { %1536 = vst.msk [vmem:[#allocation9] sm:$0xff] %vm610_vm2, %v1533_v2  ;;  %10504 = vmatprep.subr.mxu1 %v11388_v46  ;;  %v1542_v4 = vsel %vm610_vm2, %v1533_v2, 0  ;;  %v2520_v26 = vand.u32 4294901760, %v2519_v24 }
 0x43e   :  { %v1610_v6 = vand.u32 4294901760, %v1542_v4 }
 0x43f   :  { %10502 = vmatmul.mubr.f32.vlgmr.msra.gmra.mrb[8].mxu1 %v2974_v3 }
 0x440   :  { %10505 = vmatpush3.xpose.msra.mxu1 %v2985_v5  ;;  %10506 = vmatprep.mubr.msk.f32.mxu1 %vm11389_vm1, %v11388_v46  ;;  %v1611_v8 = vsub.f32 %v1542_v4, %v1610_v6 }
 0x441   :  { %10509 = vmatprep.subr.mxu1 %v11388_v46 }
 0x442   :  { %v1612_v9 = vand.u32 4294901760, %v1611_v8 }
 0x444   :  { %v1613_v11 = vsub.f32 %v1611_v8, %v1612_v9 }
 0x446   :  { %v1614_v12 = vand.u32 4294901760, %v1613_v11 }
 0x447   :  { %10507 = vmatmul.mubr.f32.vlgmr.msra.gmra.mrb[8].mxu1 %v11595_v55 }
 0x448   :  { %10510 = vmatpush3.xpose.msra.mxu1 %v2982_v59  ;;  %10412 = vmatmul.mubr.f32.vlgmr.msra.gmra.mrb[2].mxu0 %v1614_v12 }
 0x449   :  { %10415 = vmatpush3.msra.mxu0 %v1625_v13  ;;  %10511 = vmatprep.mubr.msk.f32.mxu1 %vm11389_vm1, %v11388_v46 }
 0x44a   :  { %10514 = vmatprep.subr.mxu1 %v11388_v46  ;;  %10416 = vmatprep.mubr.msk.f32.mxu0 %vm11389_vm1, %v11388_v46 }
 0x44b   :  { %10419 = vmatprep.subr.mxu0 %v11388_v46 }
 0x44f   :  { %10512 = vmatmul.mubr.f32.vlgmr.msra.gmra.mrb[8].mxu1 %v2971_v58 }
 0x450   :  { %10515 = vmatpush3.xpose.msra.mxu1 %v11598_v56  ;;  %10417 = vmatmul.mubr.f32.vlgmr.msra.gmra.mrb[2].mxu0 %v1610_v6 }
 0x451   :  { %10420 = vmatpush3.msra.mxu0 %v1622_v1  ;;  %10516 = vmatprep.mubr.msk.f32.mxu1 %vm11389_vm1, %v11388_v46 }
 0x452   :  { %10519 = vmatprep.subr.mxu1 %v11388_v46  ;;  %10421 = vmatprep.mubr.msk.f32.mxu0 %vm11389_vm1, %v11388_v46 }
 0x453   :  { %10424 = vmatprep.subr.mxu0 %v11388_v46 }
 0x457   :  { %10517 = vmatmul.mubr.f32.vlgmr.msra.gmra.mrb[8].mxu1 %v2972_v60 }
 0x458   :  { %10520 = vmatpush3.xpose.msra.mxu1 %v2983_v61  ;;  %10422 = vmatmul.mubr.f32.vlgmr.msra.gmra.mrb[2].mxu0 %v1611_v8 }
 0x459   :  { %10425 = vmatpush3.msra.mxu0 %v11570_v27  ;;  %10521 = vmatprep.mubr.msk.f32.mxu1 %vm11389_vm1, %v11388_v46 }
 0x45a   :  { %10524 = vmatprep.subr.mxu1 %v11388_v46  ;;  %10426 = vmatprep.mubr.msk.f32.mxu0 %vm11389_vm1, %v11388_v46 }
 0x45b   :  { %10429 = vmatprep.subr.mxu0 %v11388_v46 }
 0x45f   :  { %10522 = vmatmul.mubr.f32.vlgmr.msra.gmra.mrb[8].mxu1 %v11595_v55 }
 0x460   :  { %10525 = vmatpush3.xpose.msra.mxu1 %v11598_v56  ;;  %10427 = vmatmul.mubr.f32.vlgmr.msra.gmra.mrb[2].mxu0 %v1612_v9 }
 0x461   :  { %10430 = vmatpush3.msra.mxu0 %v1623_v7  ;;  %10526 = vmatprep.mubr.msk.f32.mxu1 %vm11389_vm1, %v11388_v46 }
 0x462   :  { %10431 = vmatprep.mubr.msk.f32.mxu0 %vm11389_vm1, %v11388_v46  ;;  %10434 = vmatprep.subr.mxu0 %v11388_v46 }
 0x463   :  { %10559 = vmatprep.subr.mxu1 %v11388_v46 }
 0x467   :  { %10527 = vmatmul.mubr.f32.vlgmr.msra.gmra.mrb[8].mxu1 %v11595_v55 }
 0x468   :  { %10432 = vmatmul.mubr.f32.vlgmr.msra.gmra.mrb[2].mxu0 %v1610_v6  ;;  %10561 = vmatprep.mubr.msk.f32.mxu1 %vm11389_vm1, %v11388_v46 }
 0x469   :  { %10435 = vmatpush3.msra.mxu0 %v11570_v27  ;;  %10436 = vmatprep.mubr.msk.f32.mxu0 %vm11389_vm1, %v11388_v46 }
 0x46a   :  { %10469 = vmatprep.subr.mxu0 %v11388_v46 }
 0x470   :  { %10437 = vmatmul.mubr.f32.vlgmr.msra.gmra.mrb[2].mxu0 %v1610_v6 }
 0x471   :  { %10470 = vmatpush3.xpose.msra.mxu0 %v2451_v19  ;;  %10471 = vmatprep.mubr.msk.f32.mxu0 %vm11389_vm1, %v11388_v46 }
 0x472   :  { %10474 = vmatprep.subr.mxu0 %v11388_v46 }
 0x474   :  { %10472 = vmatmul.mubr.f32.vlgmr.msra.gmra.mrb[4].mxu0 %v2520_v26 }
 0x475   :  { %10475 = vmatpush3.xpose.msra.mxu0 %v2531_v28  ;;  %10476 = vmatprep.mubr.msk.f32.mxu0 %vm11389_vm1, %v11388_v46 }
 0x476   :  { %10479 = vmatprep.subr.mxu0 %v11388_v46 }
 0x47c   :  { %10477 = vmatmul.mubr.f32.vlgmr.msra.gmra.mrb[4].mxu0 %v2516_v18 }
 0x47d   :  { %10480 = vmatpush3.xpose.msra.mxu0 %v2528_v21  ;;  %10481 = vmatprep.mubr.msk.f32.mxu0 %vm11389_vm1, %v11388_v46 }
 0x47e   :  { %10484 = vmatprep.subr.mxu0 %v11388_v46 }
 0x484   :  { %10482 = vmatmul.mubr.f32.vlgmr.msra.gmra.mrb[4].mxu0 %v2517_v20 }
 0x485   :  { %10485 = vmatpush3.xpose.msra.mxu0 %v2451_v19  ;;  %10486 = vmatprep.mubr.msk.f32.mxu0 %vm11389_vm1, %v11388_v46 }
 0x486   :  { %10489 = vmatprep.subr.mxu0 %v11388_v46 }
 0x48c   :  { %10487 = vmatmul.mubr.f32.vlgmr.msra.gmra.mrb[4].mxu0 %v2518_v22 }
 0x48d   :  { %10490 = vmatpush3.xpose.msra.mxu0 %v2529_v23  ;;  %10491 = vmatprep.mubr.msk.f32.mxu0 %vm11389_vm1, %v11388_v46 }
 0x48e   :  { %10494 = vmatprep.subr.mxu0 %v11388_v46 }
 0x494   :  { %10492 = vmatmul.mubr.f32.vlgmr.msra.gmra.mrb[4].mxu0 %v2516_v18 }
 0x495   :  { %10495 = vmatpush3.xpose.msra.mxu0 %v2451_v19  ;;  %10496 = vmatprep.mubr.msk.f32.mxu0 %vm11389_vm1, %v11388_v46 }
 0x496   :  { %10529 = vmatprep.subr.mxu0 %v11388_v46 }
 0x49c   :  { %10497 = vmatmul.mubr.f32.vlgmr.msra.gmra.mrb[4].mxu0 %v2516_v18 }
 0x49d   :  { %10531 = vmatprep.mubr.msk.f32.mxu0 %vm11389_vm1, %v11388_v46 }
 0x50e   :  { %v11675_v27 = vpop.f32.mrb[6].mxu1 }
 0x50f   :  { %v10468_v29 = vpop.f32.mrb[7].mxu1 }
 0x53a   :  { %v3346_v30 = vpop.f32.mrb[8].mxu1 }
 0x53b   :  { %v10528_v31 = vpop.f32.mrb[9].mxu1  ;;  %v3353_v32 = vsel %vm610_vm2, %v3346_v30, -inf }
 0x53c   :  { %3354 = vmax.xlane.f32.xlu0 %v3353_v32 }
 0x543   :  { %v11678_v33 = vpop.f32.mrb[2].mxu0 }
 0x544   :  { %v10438_v34 = vpop.f32.mrb[3].mxu0 }
 0x552   :  { %3827 = vrot.lane.b32.xlu0 %v11505_v49, %s11394_s9 }
 0x556   :  { %5271 = vrot.lane.b32.xlu0 %v11507_v52, %s11395_s10 }
 0x56f   :  { %v2892_v35 = vpop.f32.mrb[4].mxu0 }
 0x570   :  { %v10498_v36 = vpop.f32.mrb[5].mxu0  ;;  %v3350_v37 = vsel %vm610_vm2, %v2892_v35, -inf }
 0x575   :  { %3351 = vmax.xlane.f32.xlu0 %v3350_v37 }
 0x58b   :  { %3375 = vrot.lane.b32.xlu0 %v11507_v52, %s11394_s9 }
 0x5c9   :  { %v3355_v38 = vpop.xlane.xlu0 %3354 }
 0x5ca   :  { %v3357_v39 = vsub.f32 %v3346_v30, %v3355_v38 }
 0x5cc   :  { %v3360_v40 = vmul.f32 1.442695, %v3357_v39 }
 0x5cd   :  { %v3828_v41 = vpop.permute.xlu0 %3827 }
 0x5ce   :  { %11241 = vpow2.f32 %v3360_v40  ;;  %v3834_v42 = vand.u32 4294901760, %v3828_v41 }
 0x5d0   :  { %10560 = vmatpush3.msra.mxu1 %v3834_v42  ;;  %v3911_v58 = vsub.f32 %v3828_v41, %v3834_v42 }
 0x5d1   :  { %10564 = vmatprep.subr.mxu1 %v11388_v46  ;;  %v5272_v45 = vpop.permute.xlu0 %5271 }
 0x5d2   :  { %v3912_v62 = vand.u32 4294901760, %v3911_v58  ;;  %v5275_v7 = vsel %vm610_vm2, %v5272_v45, 0 }
 0x5d3   :  { %v11718_v10 = vand.u32 4294901760, %v5275_v7 }
 0x5d4   :  { %v3913_v1 = vsub.f32 %v3911_v58, %v3912_v62 }
 0x5d5   :  { %v5355_v12 = vsub.f32 %v5275_v7, %v11718_v10 }
 0x5d6   :  { %v3914_v4 = vand.u32 4294901760, %v3913_v1 }
 0x5d7   :  { %v5356_v15 = vand.u32 4294901760, %v5355_v12 }
 0x5d8   :  { %v11242_v43 = vpop.eup %11241 }
 0x5d9   :  { %v3365_v44 = vsel %vm610_vm2, %v11242_v43, 0.0  ;;  %v5357_v18 = vsub.f32 %v5355_v12, %v5356_v15 }
 0x5da   :  { %3366 = vadd.xlane.f32.xlu1 %v3365_v44 }
 0x5db   :  { %v5358_v20 = vand.u32 4294901760, %v5357_v18 }
 0x5eb   :  { %5269 = vrot.lane.b32.xlu1 %v11507_v52, %s11396_s11 }
 0x5ef   :  { %5723 = vrot.lane.b32.xlu1 %v11505_v49, %s11396_s11 }
 0x5f3   :  { %5725 = vrot.lane.b32.xlu1 %v11505_v49, %s11395_s10 }
 0x602   :  { %v3352_v47 = vpop.xlane.xlu0 %3351 }
 0x603   :  { %v3356_v48 = vsub.f32 %v2892_v35, %v3352_v47 }
 0x605   :  { %v3358_v50 = vmul.f32 1.442695, %v3356_v48  ;;  %v604_v48 = vld [vmem:[#allocation7 + $0x8] sm:$0xff] }
 0x606   :  { %v11689_v51 = vpop.permute.xlu0 %3375 }
 0x607   :  { %v11692_v53 = vand.u32 4294901760, %v11689_v51  ;;  %11243 = vpow2.f32 %v3358_v50  ;;  %v11798_v50 = vand.u32 4294901760, %v604_v48 }
 0x609   :  { %10530 = vmatpush3.msra.mxu0 %v11692_v53  ;;  %v3459_v22 = vsub.f32 %v11689_v51, %v11692_v53  ;;  %v4373_v51 = vsub.f32 %v604_v48, %v11798_v50 }
 0x60a   :  { %10534 = vmatprep.subr.mxu0 %v11388_v46 }
 0x60b   :  { %v3460_v26 = vand.u32 4294901760, %v3459_v22 }
 0x60d   :  { %v3461_v30 = vsub.f32 %v3459_v22, %v3460_v26 }
 0x60f   :  { %v3462_v34 = vand.u32 4294901760, %v3461_v30 }
 0x611   :  { %v11696_v54 = vpop.eup %11243 }
 0x612   :  { %v3362_v55 = vsel %vm610_vm2, %v11696_v54, 0.0 }
 0x617   :  { %3363 = vadd.xlane.f32.xlu1 %v3362_v55 }
 0x667   :  { %v3367_v56 = vpop.xlane.xlu1 %3366 }
 0x668   :  { %11245 = vrcp.f32 %v3367_v56 }
 0x66b   :  { %v5270_v5 = vpop.permute.xlu1 %5269 }
 0x66c   :  { %v5273_v6 = vsel %vm610_vm2, %v5270_v5, 0 }
 0x66d   :  { %v11715_v8 = vand.u32 4294901760, %v5273_v6 }
 0x66f   :  { %v5724_v9 = vpop.permute.xlu1 %5723  ;;  %v5344_v11 = vsub.f32 %v5273_v6, %v11715_v8 }
 0x670   :  { %v5727_v35 = vsel %vm610_vm2, %v5724_v9, 0 }
 0x671   :  { %v5345_v14 = vand.u32 4294901760, %v5344_v11  ;;  %v5797_v37 = vand.u32 4294901760, %v5727_v35 }
 0x672   :  { %v11246_v57 = vpop.eup %11245 }
 0x673   :  { %v3371_v59 = vmul.f32 %v11246_v57, %v11242_v43  ;;  %v5726_v13 = vpop.permute.xlu1 %5725  ;;  %v5346_v17 = vsub.f32 %v5344_v11, %v5345_v14  ;;  %v5798_v39 = vsub.f32 %v5727_v35, %v5797_v37 }
 0x674   :  { %v5729_v36 = vsel %vm610_vm2, %v5726_v13, 0 }
 0x675   :  { %3374 = vst.msk [vmem:[#allocation9 + $0x28] sm:$0xff] %vm610_vm2, %v3371_v59  ;;  %v3831_v60 = vsel %vm610_vm2, %v3371_v59, 0  ;;  %v5347_v19 = vand.u32 4294901760, %v5346_v17  ;;  %v5732_v38 = vand.u32 4294901760, %v5729_v36  ;;  %v5799_v41 = vand.u32 4294901760, %v5798_v39 }
 0x676   :  { %v3899_v61 = vand.u32 4294901760, %v3831_v60 }
 0x677   :  { %v5809_v40 = vsub.f32 %v5729_v36, %v5732_v38  ;;  %v5800_v43 = vsub.f32 %v5798_v39, %v5799_v41 }
 0x678   :  { %v3900_v63 = vsub.f32 %v3831_v60, %v3899_v61 }
 0x679   :  { %v5801_v45 = vand.u32 4294901760, %v5800_v43 }
 0x67a   :  { %v3901_v0 = vand.u32 4294901760, %v3900_v63 }
 0x67c   :  { %v3902_v2 = vsub.f32 %v3900_v63, %v3901_v0 }
 0x67e   :  { %v3903_v3 = vand.u32 4294901760, %v3902_v2 }
 0x680   :  { %10562 = vmatmul.mubr.f32.vlgmr.msra.gmra.mrb[10].mxu1 %v3903_v3 }
 0x681   :  { %10565 = vmatpush3.msra.mxu1 %v3914_v4  ;;  %10566 = vmatprep.mubr.msk.f32.mxu1 %vm11389_vm1, %v11388_v46 }
 0x682   :  { %10569 = vmatprep.subr.mxu1 %v11388_v46 }
 0x688   :  { %10567 = vmatmul.mubr.f32.vlgmr.msra.gmra.mrb[10].mxu1 %v3899_v61 }
 0x689   :  { %10570 = vmatpush3.msra.mxu1 %v3911_v58  ;;  %10571 = vmatprep.mubr.msk.f32.mxu1 %vm11389_vm1, %v11388_v46 }
 0x68a   :  { %10574 = vmatprep.subr.mxu1 %v11388_v46 }
 0x690   :  { %10572 = vmatmul.mubr.f32.vlgmr.msra.gmra.mrb[10].mxu1 %v3900_v63 }
 0x691   :  { %10575 = vmatpush3.msra.mxu1 %v3834_v42  ;;  %10576 = vmatprep.mubr.msk.f32.mxu1 %vm11389_vm1, %v11388_v46 }
 0x692   :  { %10579 = vmatprep.subr.mxu1 %v11388_v46 }
 0x698   :  { %10577 = vmatmul.mubr.f32.vlgmr.msra.gmra.mrb[10].mxu1 %v3901_v0 }
 0x699   :  { %10580 = vmatpush3.msra.mxu1 %v3912_v62  ;;  %10581 = vmatprep.mubr.msk.f32.mxu1 %vm11389_vm1, %v11388_v46 }
 0x69a   :  { %10584 = vmatprep.subr.mxu1 %v11388_v46 }
 0x6a0   :  { %10582 = vmatmul.mubr.f32.vlgmr.msra.gmra.mrb[10].mxu1 %v3899_v61 }
 0x6a1   :  { %10585 = vmatpush3.msra.mxu1 %v3834_v42  ;;  %10586 = vmatprep.mubr.msk.f32.mxu1 %vm11389_vm1, %v11388_v46  ;;  %v5810_v42 = vand.u32 4294901760, %v5809_v40 }
 0x6a2   :  { %10649 = vmatprep.subr.mxu1 %v11388_v46 }
 0x6a3   :  { %v5811_v44 = vsub.f32 %v5809_v40, %v5810_v42 }
 0x6a4   :  { %v3364_v16 = vpop.xlane.xlu1 %3363 }
 0x6a5   :  { %11247 = vrcp.f32 %v3364_v16  ;;  %v5812_v47 = vand.u32 4294901760, %v5811_v44 }
 0x6a8   :  { %10587 = vmatmul.mubr.f32.vlgmr.msra.gmra.mrb[10].mxu1 %v3899_v61 }
 0x6a9   :  { %10650 = vmatpush3.xpose.msra.mxu1 %v11718_v10  ;;  %10651 = vmatprep.mubr.msk.f32.mxu1 %vm11389_vm1, %v11388_v46 }
 0x6aa   :  { %10654 = vmatprep.subr.mxu1 %v11388_v46 }
 0x6ac   :  { %10652 = vmatmul.mubr.f32.vlgmr.msra.gmra.mrb[12].mxu1 %v5347_v19  ;;  %v4778_v19 = vsel %vm610_vm2, %v11675_v27, 0 }
 0x6ad   :  { %10655 = vmatpush3.xpose.msra.mxu1 %v5358_v20  ;;  %10656 = vmatprep.mubr.msk.f32.mxu1 %vm11389_vm1, %v11388_v46 }
 0x6ae   :  { %10659 = vmatprep.subr.mxu1 %v11388_v46 }
 0x6af   :  { %v11248_v21 = vpop.eup %11247 }
 0x6b0   :  { %v3369_v23 = vmul.f32 %v11248_v21, %v11696_v54  ;;  %v4856_v21 = vand.u32 4294901760, %v4778_v19 }
 0x6b2   :  { %3373 = vst.msk [vmem:[#allocation9 + $0x8] sm:$0xff] %vm610_vm2, %v3369_v23  ;;  %v3379_v24 = vsel %vm610_vm2, %v3369_v23, 0 }
 0x6b3   :  { %v11737_v25 = vand.u32 4294901760, %v3379_v24 }
 0x6b4   :  { %10657 = vmatmul.mubr.f32.vlgmr.msra.gmra.mrb[12].mxu1 %v11715_v8 }
 0x6b5   :  { %10660 = vmatpush3.xpose.msra.mxu1 %v5355_v12  ;;  %10661 = vmatprep.mubr.msk.f32.mxu1 %vm11389_vm1, %v11388_v46  ;;  %v3448_v28 = vsub.f32 %v3379_v24, %v11737_v25 }
 0x6b6   :  { %10664 = vmatprep.subr.mxu1 %v11388_v46 }
 0x6b7   :  { %v3449_v29 = vand.u32 4294901760, %v3448_v28 }
 0x6b9   :  { %v3450_v31 = vsub.f32 %v3448_v28, %v3449_v29 }
 0x6bb   :  { %v3451_v32 = vand.u32 4294901760, %v3450_v31 }
 0x6bc   :  { %10662 = vmatmul.mubr.f32.vlgmr.msra.gmra.mrb[12].mxu1 %v5344_v11 }
 0x6bd   :  { %10665 = vmatpush3.xpose.msra.mxu1 %v11718_v10  ;;  %10532 = vmatmul.mubr.f32.vlgmr.msra.gmra.mrb[6].mxu0 %v3451_v32 }
 0x6be   :  { %10535 = vmatpush3.msra.mxu0 %v3462_v34  ;;  %10666 = vmatprep.mubr.msk.f32.mxu1 %vm11389_vm1, %v11388_v46 }
 0x6bf   :  { %10669 = vmatprep.subr.mxu1 %v11388_v46  ;;  %10536 = vmatprep.mubr.msk.f32.mxu0 %vm11389_vm1, %v11388_v46 }
 0x6c0   :  { %10539 = vmatprep.subr.mxu0 %v11388_v46 }
 0x6c4   :  { %10667 = vmatmul.mubr.f32.vlgmr.msra.gmra.mrb[12].mxu1 %v5345_v14  ;;  %v603_v14 = vld [vmem:[#allocation7] sm:$0xff] }
 0x6c5   :  { %10670 = vmatpush3.xpose.msra.mxu1 %v5356_v15  ;;  %10537 = vmatmul.mubr.f32.vlgmr.msra.gmra.mrb[6].mxu0 %v11737_v25  ;;  %v4775_v15 = vsel %vm610_vm2, %v11678_v33, 0  ;;  %v4781_v16 = vand.u32 4294901760, %v603_v14  ;;  %v4857_v33 = vsub.f32 %v4778_v19, %v4856_v21 }
 0x6c6   :  { %10540 = vmatpush3.msra.mxu0 %v3459_v22  ;;  %10671 = vmatprep.mubr.msk.f32.mxu1 %vm11389_vm1, %v11388_v46  ;;  %v4846_v17 = vand.u32 4294901760, %v4775_v15 }
 0x6c7   :  { %10674 = vmatprep.subr.mxu1 %v11388_v46  ;;  %10541 = vmatprep.mubr.msk.f32.mxu0 %vm11389_vm1, %v11388_v46  ;;  %v4868_v18 = vsub.f32 %v603_v14, %v4781_v16 }
 0x6c8   :  { %10544 = vmatprep.subr.mxu0 %v11388_v46  ;;  %v4847_v20 = vsub.f32 %v4775_v15, %v4846_v17 }
 0x6c9   :  { %v4869_v22 = vand.u32 4294901760, %v4868_v18 }
 0x6ca   :  { %v4848_v23 = vand.u32 4294901760, %v4847_v20 }
 0x6cb   :  { %v4870_v24 = vsub.f32 %v4868_v18, %v4869_v22 }
 0x6cc   :  { %10672 = vmatmul.mubr.f32.vlgmr.msra.gmra.mrb[12].mxu1 %v11715_v8 }
 0x6cd   :  { %10675 = vmatpush3.xpose.msra.mxu1 %v11718_v10  ;;  %10542 = vmatmul.mubr.f32.vlgmr.msra.gmra.mrb[6].mxu0 %v3448_v28  ;;  %v4871_v28 = vand.u32 4294901760, %v4870_v24  ;;  %v605_v24 = vld [vmem:[#allocation7 + $0x10] sm:$0xff] }
 0x6ce   :  { %10545 = vmatpush3.msra.mxu0 %v11692_v53  ;;  %10676 = vmatprep.mubr.msk.f32.mxu1 %vm11389_vm1, %v11388_v46 }
 0x6cf   :  { %10679 = vmatprep.subr.mxu1 %v11388_v46  ;;  %10546 = vmatprep.mubr.msk.f32.mxu0 %vm11389_vm1, %v11388_v46 }
 0x6d0   :  { %10549 = vmatprep.subr.mxu0 %v11388_v46 }
 0x6d4   :  { %10677 = vmatmul.mubr.f32.vlgmr.msra.gmra.mrb[12].mxu1 %v11715_v8 }
 0x6d5   :  { %10680 = vmatpush3.xpose.msra.mxu1 %v5732_v38  ;;  %10547 = vmatmul.mubr.f32.vlgmr.msra.gmra.mrb[6].mxu0 %v3449_v29 }
 0x6d6   :  { %10550 = vmatpush3.msra.mxu0 %v3460_v26  ;;  %10681 = vmatprep.mubr.msk.f32.mxu1 %vm11389_vm1, %v11388_v46  ;;  %v4858_v26 = vand.u32 4294901760, %v4857_v33 }
 0x6d7   :  { %10684 = vmatprep.subr.mxu1 %v11388_v46  ;;  %10551 = vmatprep.mubr.msk.f32.mxu0 %vm11389_vm1, %v11388_v46 }
 0x6d8   :  { %10682 = vmatmul.mubr.f32.vlgmr.msra.gmra.mrb[14].mxu1 %v5801_v45  ;;  %10554 = vmatprep.subr.mxu0 %v11388_v46  ;;  %v4859_v27 = vsub.f32 %v4857_v33, %v4858_v26 }
 0x6d9   :  { %10685 = vmatpush3.xpose.msra.mxu1 %v5812_v47  ;;  %10686 = vmatprep.mubr.msk.f32.mxu1 %vm11389_vm1, %v11388_v46 }
 0x6da   :  { %10689 = vmatprep.subr.mxu1 %v11388_v46  ;;  %v4860_v30 = vand.u32 4294901760, %v4859_v27 }
 0x6dd   :  { %10552 = vmatmul.mubr.f32.vlgmr.msra.gmra.mrb[6].mxu0 %v11737_v25 }
 0x6de   :  { %10555 = vmatpush3.msra.mxu0 %v11692_v53  ;;  %10556 = vmatprep.mubr.msk.f32.mxu0 %vm11389_vm1, %v11388_v46  ;;  %v4374_v53 = vand.u32 4294901760, %v4373_v51 }
 0x6df   :  { %10589 = vmatprep.subr.mxu0 %v11798_v50 }
 0x6e0   :  { %10687 = vmatmul.mubr.f32.vlgmr.msra.gmra.mrb[14].mxu1 %v5797_v37  ;;  %v4375_v54 = vsub.f32 %v4373_v51, %v4374_v53 }
 0x6e1   :  { %10690 = vmatpush3.xpose.msra.mxu1 %v5809_v40  ;;  %10691 = vmatprep.mubr.msk.f32.mxu1 %vm11389_vm1, %v11388_v46 }
 0x6e2   :  { %10694 = vmatprep.subr.mxu1 %v11388_v46  ;;  %v4376_v55 = vand.u32 4294901760, %v4375_v54 }
 0x6e5   :  { %10557 = vmatmul.mubr.f32.vlgmr.msra.gmra.mrb[6].mxu0 %v11737_v25  ;;  %v4849_v25 = vsub.f32 %v4847_v20, %v4848_v23 }
 0x6e6   :  { %10590 = vmatpush3.msra.mxu0 %v11798_v50 }
 0x6e7   :  { %10594 = vmatprep.subr.mxu0 %v4376_v55  ;;  %v4850_v29 = vand.u32 4294901760, %v4849_v25  ;;  %v7113_v25 = vand.u32 4294901760, %v605_v24 }
 0x6e8   :  { %10692 = vmatmul.mubr.f32.vlgmr.msra.gmra.mrb[14].mxu1 %v5798_v39 }
 0x6e9   :  { %10695 = vmatpush3.xpose.msra.mxu1 %v5732_v38  ;;  %10696 = vmatprep.mubr.msk.f32.mxu1 %vm11389_vm1, %v11388_v46 }
 0x6ea   :  { %10699 = vmatprep.subr.mxu1 %v11388_v46 }
 0x6f0   :  { %10697 = vmatmul.mubr.f32.vlgmr.msra.gmra.mrb[14].mxu1 %v5799_v41 }
 0x6f1   :  { %10700 = vmatpush3.xpose.msra.mxu1 %v5810_v42  ;;  %10701 = vmatprep.mubr.msk.f32.mxu1 %vm11389_vm1, %v11388_v46 }
 0x6f2   :  { %10704 = vmatprep.subr.mxu1 %v11388_v46 }
 0x6f8   :  { %10702 = vmatmul.mubr.f32.vlgmr.msra.gmra.mrb[14].mxu1 %v5797_v37 }
 0x6f9   :  { %10705 = vmatpush3.xpose.msra.mxu1 %v5732_v38  ;;  %10706 = vmatprep.mubr.msk.f32.mxu1 %vm11389_vm1, %v11388_v46 }
 0x6fa   :  { %10739 = vmatprep.subr.mxu1 %v11388_v46 }
 0x700   :  { %10707 = vmatmul.mubr.f32.vlgmr.msra.gmra.mrb[14].mxu1 %v5797_v37 }
 0x701   :  { %10741 = vmatprep.mubr.msk.f32.mxu1 %vm11389_vm1, %v11388_v46 }
 0x77b   :  { %v4275_v56 = vpop.f32.mrb[10].mxu1 }
 0x77c   :  { %v10588_v57 = vpop.f32.mrb[11].mxu1  ;;  %v4283_v61 = vsel %vm610_vm2, %v4275_v56, 0 }
 0x77d   :  { %v4361_v62 = vand.u32 4294901760, %v4283_v61 }
 0x77f   :  { %v4362_v63 = vsub.f32 %v4283_v61, %v4361_v62 }
 0x781   :  { %v4363_v4 = vand.u32 4294901760, %v4362_v63 }
 0x783   :  { %v4364_v7 = vsub.f32 %v4362_v63, %v4363_v4 }
 0x785   :  { %v4365_v10 = vand.u32 4294901760, %v4364_v7 }
 0x7a7   :  { %v11803_v58 = vpop.f32.mrb[12].mxu1 }
 0x7a8   :  { %v10678_v59 = vpop.f32.mrb[13].mxu1  ;;  %v6177_v60 = vsel %vm610_vm2, %v11803_v58, -inf }
 0x7a9   :  { %6178 = vmax.xlane.f32.xlu1 %v6177_v60 }
 0x7b8   :  { %v3823_v0 = vpop.f32.mrb[6].mxu0 }
 0x7b9   :  { %v4280_v1 = vsel %vm610_vm2, %v3823_v0, 0  ;;  %v10558_v2 = vpop.f32.mrb[7].mxu0 }
 0x7ba   :  { %v4351_v3 = vand.u32 4294901760, %v4280_v1 }
 0x7bc   :  { %v4352_v5 = vsub.f32 %v4280_v1, %v4351_v3 }
 0x7be   :  { %v4353_v6 = vand.u32 4294901760, %v4352_v5 }
 0x7c0   :  { %v4354_v8 = vsub.f32 %v4352_v5, %v4353_v6 }
 0x7c2   :  { %v4355_v9 = vand.u32 4294901760, %v4354_v8 }
 0x7c4   :  { %10591 = vmatprep.mubr.f32.mxu0 %v4355_v9 }
 0x7c5   :  { %10592 = vmatmul.mubr.f32.vlgmr.msra.gmra.mrb[8].mxu0 %v4365_v10 }
 0x7c6   :  { %10596 = vmatprep.mubr.f32.mxu0 %v4351_v3  ;;  %10595 = vmatpush3.msra.mxu0 %v4376_v55 }
 0x7c7   :  { %10599 = vmatprep.subr.mxu0 %v4373_v51 }
 0x7cd   :  { %10597 = vmatmul.mubr.f32.vlgmr.msra.gmra.mrb[8].mxu0 %v4361_v62 }
 0x7ce   :  { %10601 = vmatprep.mubr.f32.mxu0 %v4352_v5  ;;  %10600 = vmatpush3.msra.mxu0 %v4373_v51 }
 0x7cf   :  { %10604 = vmatprep.subr.mxu0 %v11798_v50 }
 0x7d3   :  { %v11810_v11 = vpop.f32.mrb[14].mxu1 }
 0x7d4   :  { %v10708_v12 = vpop.f32.mrb[15].mxu1  ;;  %v6180_v13 = vsel %vm610_vm2, %v11810_v11, -inf }
 0x7d5   :  { %10602 = vmatmul.mubr.f32.vlgmr.msra.gmra.mrb[8].mxu0 %v4362_v63  ;;  %6181 = vmax.xlane.f32.xlu1 %v6180_v13 }
 0x7d6   :  { %10606 = vmatprep.mubr.f32.mxu0 %v4353_v6  ;;  %10605 = vmatpush3.msra.mxu0 %v11798_v50 }
 0x7d7   :  { %10609 = vmatprep.subr.mxu0 %v4374_v53 }
 0x7dd   :  { %10607 = vmatmul.mubr.f32.vlgmr.msra.gmra.mrb[8].mxu0 %v4363_v4 }
 0x7de   :  { %10611 = vmatprep.mubr.f32.mxu0 %v4351_v3  ;;  %10610 = vmatpush3.msra.mxu0 %v4374_v53 }
 0x7df   :  { %10614 = vmatprep.subr.mxu0 %v11798_v50 }
 0x7e5   :  { %10612 = vmatmul.mubr.f32.vlgmr.msra.gmra.mrb[8].mxu0 %v4361_v62 }
 0x7e6   :  { %10616 = vmatprep.mubr.f32.mxu0 %v4351_v3  ;;  %6202 = vrot.lane.b32.xlu1 %v11507_v52, %s11397_s12 }
 0x7e7   :  { %10615 = vmatpush3.msra.mxu0 %v11798_v50 }
 0x7e8   :  { %10619 = vmatprep.subr.mxu0 %v4781_v16 }
 0x7ed   :  { %10617 = vmatmul.mubr.f32.vlgmr.msra.gmra.mrb[8].mxu0 %v4361_v62 }
 0x7ee   :  { %10621 = vmatprep.mubr.f32.mxu0 %v4850_v29  ;;  %10620 = vmatpush3.msra.mxu0 %v4781_v16 }
 0x7ef   :  { %10624 = vmatprep.subr.mxu0 %v4871_v28 }
 0x7f5   :  { %10622 = vmatmul.mubr.f32.vlgmr.msra.gmra.mrb[8].mxu0 %v4860_v30 }
 0x7f6   :  { %10626 = vmatprep.mubr.f32.mxu0 %v4846_v17  ;;  %10625 = vmatpush3.msra.mxu0 %v4871_v28 }
 0x7f7   :  { %10629 = vmatprep.subr.mxu0 %v4868_v18 }
 0x7fd   :  { %10627 = vmatmul.mubr.f32.vlgmr.msra.gmra.mrb[8].mxu0 %v4856_v21 }
 0x7fe   :  { %10631 = vmatprep.mubr.f32.mxu0 %v4847_v20  ;;  %10630 = vmatpush3.msra.mxu0 %v4868_v18 }
 0x7ff   :  { %10634 = vmatprep.subr.mxu0 %v4781_v16 }
 0x805   :  { %10632 = vmatmul.mubr.f32.vlgmr.msra.gmra.mrb[8].mxu0 %v4857_v33 }
 0x806   :  { %10636 = vmatprep.mubr.f32.mxu0 %v4848_v23  ;;  %10635 = vmatpush3.msra.mxu0 %v4781_v16 }
 0x807   :  { %10639 = vmatprep.subr.mxu0 %v4869_v22 }
 0x80d   :  { %10637 = vmatmul.mubr.f32.vlgmr.msra.gmra.mrb[8].mxu0 %v4858_v26  ;;  %v7200_v26 = vsub.f32 %v605_v24, %v7113_v25 }
 0x80e   :  { %10641 = vmatprep.mubr.f32.mxu0 %v4846_v17  ;;  %10640 = vmatpush3.msra.mxu0 %v4869_v22 }
 0x80f   :  { %10644 = vmatprep.subr.mxu0 %v4781_v16  ;;  %v7201_v28 = vand.u32 4294901760, %v7200_v26 }
 0x811   :  { %v7202_v29 = vsub.f32 %v7200_v26, %v7201_v28 }
 0x813   :  { %v7203_v27 = vand.u32 4294901760, %v7202_v29 }
 0x815   :  { %10642 = vmatmul.mubr.f32.vlgmr.msra.gmra.mrb[8].mxu0 %v4856_v21 }
 0x816   :  { %10646 = vmatprep.mubr.f32.mxu0 %v4846_v17  ;;  %10645 = vmatpush3.msra.mxu0 %v4781_v16 }
 0x817   :  { %10709 = vmatprep.subr.mxu0 %v11388_v46 }
 0x81d   :  { %10647 = vmatmul.mubr.f32.vlgmr.msra.gmra.mrb[8].mxu0 %v4856_v21 }
 0x81e   :  { %10711 = vmatprep.mubr.msk.f32.mxu0 %vm11389_vm1, %v11388_v46 }
 0x836   :  { %v6179_v31 = vpop.xlane.xlu1 %6178 }
 0x837   :  { %v6183_v32 = vsub.f32 %v11803_v58, %v6179_v31 }
 0x839   :  { %v6185_v34 = vmul.f32 1.442695, %v6183_v32 }
 0x83b   :  { %11249 = vpow2.f32 %v6185_v34 }
 0x845   :  { %v11250_v35 = vpop.eup %11249 }
 0x846   :  { %v6189_v36 = vsel %vm610_vm2, %v11250_v35, 0.0 }
 0x847   :  { %6190 = vadd.xlane.f32.xlu0 %v6189_v36 }
 0x85d   :  { %7605 = vrot.lane.b32.xlu0 %v11507_v52, %s11398_s13 }
 0x862   :  { %v6182_v37 = vpop.xlane.xlu1 %6181 }
 0x863   :  { %v6184_v38 = vsub.f32 %v11810_v11, %v6182_v37 }
 0x865   :  { %v6187_v39 = vmul.f32 1.442695, %v6184_v38 }
 0x866   :  { %v6203_v40 = vpop.permute.xlu1 %6202 }
 0x867   :  { %11251 = vpow2.f32 %v6187_v39  ;;  %v6209_v41 = vand.u32 4294901760, %v6203_v40 }
 0x869   :  { %10710 = vmatpush3.msra.mxu0 %v6209_v41  ;;  %v6286_v47 = vsub.f32 %v6203_v40, %v6209_v41 }
 0x86a   :  { %10714 = vmatprep.subr.mxu0 %v11388_v46 }
 0x86b   :  { %v6287_v53 = vand.u32 4294901760, %v6286_v47 }
 0x86d   :  { %v6288_v56 = vsub.f32 %v6286_v47, %v6287_v53 }
 0x86f   :  { %v6289_v59 = vand.u32 4294901760, %v6288_v56 }
 0x871   :  { %v11252_v42 = vpop.eup %11251 }
 0x872   :  { %v6192_v43 = vsel %vm610_vm2, %v11252_v42, 0.0 }
 0x873   :  { %6193 = vadd.xlane.f32.xlu1 %v6192_v43 }
 0x884   :  { %6654 = vrot.lane.b32.xlu1 %v11505_v49, %s11397_s12 }
 0x888   :  { %7603 = vrot.lane.b32.xlu1 %v11507_v52, %s11399_s14 }
 0x88c   :  { %8057 = vrot.lane.b32.xlu1 %v11505_v49, %s11399_s14 }
 0x890   :  { %8059 = vrot.lane.b32.xlu1 %v11505_v49, %s11398_s13 }
 0x8d4   :  { %v6191_v44 = vpop.xlane.xlu0 %6190 }
 0x8d5   :  { %11253 = vrcp.f32 %v6191_v44 }
 0x8d8   :  { %v7606_v12 = vpop.permute.xlu0 %7605 }
 0x8d9   :  { %v7609_v14 = vsel %vm610_vm2, %v7606_v12, 0 }
 0x8da   :  { %v7612_v16 = vand.u32 4294901760, %v7609_v14 }
 0x8dc   :  { %v7689_v18 = vsub.f32 %v7609_v14, %v7612_v16 }
 0x8de   :  { %v7690_v20 = vand.u32 4294901760, %v7689_v18 }
 0x8df   :  { %v11254_v45 = vpop.eup %11253 }
 0x8e0   :  { %v6196_v48 = vmul.f32 %v11254_v45, %v11250_v35  ;;  %v7691_v22 = vsub.f32 %v7689_v18, %v7690_v20 }
 0x8e2   :  { %6200 = vst.msk [vmem:[#allocation9 + $0x10] sm:$0xff] %vm610_vm2, %v6196_v48  ;;  %v6206_v50 = vsel %vm610_vm2, %v6196_v48, 0  ;;  %v7692_v33 = vand.u32 4294901760, %v7691_v22 }
 0x8e3   :  { %v6274_v51 = vand.u32 4294901760, %v6206_v50 }
 0x8e5   :  { %v6275_v54 = vsub.f32 %v6206_v50, %v6274_v51 }
 0x8e7   :  { %v6276_v55 = vand.u32 4294901760, %v6275_v54 }
 0x8e9   :  { %v6277_v57 = vsub.f32 %v6275_v54, %v6276_v55 }
 0x8eb   :  { %v6278_v58 = vand.u32 4294901760, %v6277_v57 }
 0x8ed   :  { %10712 = vmatmul.mubr.f32.vlgmr.msra.gmra.mrb[10].mxu0 %v6278_v58 }
 0x8ee   :  { %10715 = vmatpush3.msra.mxu0 %v6289_v59  ;;  %10716 = vmatprep.mubr.msk.f32.mxu0 %vm11389_vm1, %v11388_v46 }
 0x8ef   :  { %10719 = vmatprep.subr.mxu0 %v11388_v46 }
 0x8f5   :  { %10717 = vmatmul.mubr.f32.vlgmr.msra.gmra.mrb[10].mxu0 %v6274_v51 }
 0x8f6   :  { %10720 = vmatpush3.msra.mxu0 %v6286_v47  ;;  %10721 = vmatprep.mubr.msk.f32.mxu0 %vm11389_vm1, %v11388_v46 }
 0x8f7   :  { %10724 = vmatprep.subr.mxu0 %v11388_v46 }
 0x8fd   :  { %10722 = vmatmul.mubr.f32.vlgmr.msra.gmra.mrb[10].mxu0 %v6275_v54 }
 0x8fe   :  { %10725 = vmatpush3.msra.mxu0 %v6209_v41  ;;  %10726 = vmatprep.mubr.msk.f32.mxu0 %vm11389_vm1, %v11388_v46 }
 0x8ff   :  { %10729 = vmatprep.subr.mxu0 %v11388_v46 }
 0x900   :  { %v6194_v60 = vpop.xlane.xlu1 %6193 }
 0x901   :  { %11255 = vrcp.f32 %v6194_v60 }
 0x904   :  { %v6655_v61 = vpop.permute.xlu1 %6654 }
 0x905   :  { %v6661_v62 = vand.u32 4294901760, %v6655_v61  ;;  %10727 = vmatmul.mubr.f32.vlgmr.msra.gmra.mrb[10].mxu0 %v6276_v55 }
 0x906   :  { %10730 = vmatpush3.msra.mxu0 %v6287_v53  ;;  %10731 = vmatprep.mubr.msk.f32.mxu0 %vm11389_vm1, %v11388_v46 }
 0x907   :  { %10740 = vmatpush3.msra.mxu1 %v6661_v62  ;;  %10734 = vmatprep.subr.mxu0 %v11388_v46  ;;  %v6738_v1 = vsub.f32 %v6655_v61, %v6661_v62 }
 0x908   :  { %10744 = vmatprep.subr.mxu1 %v11388_v46  ;;  %v7604_v11 = vpop.permute.xlu1 %7603 }
 0x909   :  { %v6739_v4 = vand.u32 4294901760, %v6738_v1  ;;  %v7607_v13 = vsel %vm610_vm2, %v7604_v11, 0 }
 0x90a   :  { %v7677_v15 = vand.u32 4294901760, %v7607_v13 }
 0x90b   :  { %v11256_v63 = vpop.eup %11255  ;;  %v6740_v7 = vsub.f32 %v6738_v1, %v6739_v4 }
 0x90c   :  { %v6198_v0 = vmul.f32 %v11256_v63, %v11252_v42  ;;  %v7678_v17 = vsub.f32 %v7607_v13, %v7677_v15  ;;  %v8058_v48 = vpop.permute.xlu1 %8057 }
 0x90d   :  { %10732 = vmatmul.mubr.f32.vlgmr.msra.gmra.mrb[10].mxu0 %v6274_v51  ;;  %v6741_v10 = vand.u32 4294901760, %v6740_v7 }
 0x90e   :  { %6201 = vst.msk [vmem:[#allocation9 + $0x30] sm:$0xff] %vm610_vm2, %v6198_v0  ;;  %10735 = vmatpush3.msra.mxu0 %v6209_v41  ;;  %10736 = vmatprep.mubr.msk.f32.mxu0 %vm11389_vm1, %v11388_v46  ;;  %v6658_v2 = vsel %vm610_vm2, %v6198_v0, 0  ;;  %v7679_v19 = vand.u32 4294901760, %v7678_v17 }
 0x90f   :  { %v6726_v3 = vand.u32 4294901760, %v6658_v2  ;;  %10769 = vmatprep.subr.mxu0 %v7113_v25 }
 0x910   :  { %v7680_v21 = vsub.f32 %v7678_v17, %v7679_v19  ;;  %v8060_v50 = vpop.permute.xlu1 %8059 }
 0x911   :  { %v6727_v5 = vsub.f32 %v6658_v2, %v6726_v3  ;;  %v8063_v53 = vsel %vm610_vm2, %v8060_v50, 0 }
 0x912   :  { %v7681_v23 = vand.u32 4294901760, %v7680_v21  ;;  %v8066_v55 = vand.u32 4294901760, %v8063_v53 }
 0x913   :  { %v6728_v6 = vand.u32 4294901760, %v6727_v5 }
 0x914   :  { %v8143_v57 = vsub.f32 %v8063_v53, %v8066_v55 }
 0x915   :  { %10737 = vmatmul.mubr.f32.vlgmr.msra.gmra.mrb[10].mxu0 %v6274_v51  ;;  %v6729_v8 = vsub.f32 %v6727_v5, %v6728_v6  ;;  %v8061_v51 = vsel %vm610_vm2, %v8058_v48, 0 }
 0x916   :  { %10770 = vmatpush3.msra.mxu0 %v7113_v25  ;;  %v8131_v54 = vand.u32 4294901760, %v8061_v51 }
 0x917   :  { %v6730_v9 = vand.u32 4294901760, %v6729_v8  ;;  %10774 = vmatprep.subr.mxu0 %v7203_v27 }
 0x918   :  { %v8132_v56 = vsub.f32 %v8061_v51, %v8131_v54 }
 0x919   :  { %10742 = vmatmul.mubr.f32.vlgmr.msra.gmra.mrb[16].mxu1 %v6730_v9 }
 0x91a   :  { %10745 = vmatpush3.msra.mxu1 %v6741_v10  ;;  %10746 = vmatprep.mubr.msk.f32.mxu1 %vm11389_vm1, %v11388_v46  ;;  %v8133_v61 = vand.u32 4294901760, %v8132_v56 }
 0x91b   :  { %10749 = vmatprep.subr.mxu1 %v11388_v46 }
 0x91c   :  { %v8134_v63 = vsub.f32 %v8132_v56, %v8133_v61 }
 0x921   :  { %10747 = vmatmul.mubr.f32.vlgmr.msra.gmra.mrb[16].mxu1 %v6726_v3 }
 0x922   :  { %10750 = vmatpush3.msra.mxu1 %v6738_v1  ;;  %10751 = vmatprep.mubr.msk.f32.mxu1 %vm11389_vm1, %v11388_v46  ;;  %v8135_v1 = vand.u32 4294901760, %v8134_v63 }
 0x923   :  { %10754 = vmatprep.subr.mxu1 %v11388_v46 }
 0x929   :  { %10752 = vmatmul.mubr.f32.vlgmr.msra.gmra.mrb[16].mxu1 %v6727_v5 }
 0x92a   :  { %10755 = vmatpush3.msra.mxu1 %v6661_v62  ;;  %10756 = vmatprep.mubr.msk.f32.mxu1 %vm11389_vm1, %v11388_v46 }
 0x92b   :  { %10759 = vmatprep.subr.mxu1 %v11388_v46 }
 0x931   :  { %10757 = vmatmul.mubr.f32.vlgmr.msra.gmra.mrb[16].mxu1 %v6728_v6 }
 0x932   :  { %10760 = vmatpush3.msra.mxu1 %v6739_v4  ;;  %10761 = vmatprep.mubr.msk.f32.mxu1 %vm11389_vm1, %v11388_v46 }
 0x933   :  { %10764 = vmatprep.subr.mxu1 %v11388_v46 }
 0x939   :  { %10762 = vmatmul.mubr.f32.vlgmr.msra.gmra.mrb[16].mxu1 %v6726_v3 }
 0x93a   :  { %10765 = vmatpush3.msra.mxu1 %v6661_v62  ;;  %10766 = vmatprep.mubr.msk.f32.mxu1 %vm11389_vm1, %v11388_v46  ;;  %v8144_v62 = vand.u32 4294901760, %v8143_v57 }
 0x93b   :  { %10799 = vmatprep.subr.mxu1 %v11388_v46 }
 0x93c   :  { %v8145_v0 = vsub.f32 %v8143_v57, %v8144_v62 }
 0x93e   :  { %v8146_v2 = vand.u32 4294901760, %v8145_v0 }
 0x941   :  { %10767 = vmatmul.mubr.f32.vlgmr.msra.gmra.mrb[16].mxu1 %v6726_v3 }
 0x942   :  { %10800 = vmatpush3.xpose.msra.mxu1 %v7612_v16  ;;  %10801 = vmatprep.mubr.msk.f32.mxu1 %vm11389_vm1, %v11388_v46 }
 0x943   :  { %10804 = vmatprep.subr.mxu1 %v11388_v46 }
 0x945   :  { %10802 = vmatmul.mubr.f32.vlgmr.msra.gmra.mrb[18].mxu1 %v7681_v23 }
 0x946   :  { %10805 = vmatpush3.xpose.msra.mxu1 %v7692_v33  ;;  %10806 = vmatprep.mubr.msk.f32.mxu1 %vm11389_vm1, %v11388_v46 }
 0x947   :  { %10809 = vmatprep.subr.mxu1 %v11388_v46 }
 0x94d   :  { %10807 = vmatmul.mubr.f32.vlgmr.msra.gmra.mrb[18].mxu1 %v7677_v15 }
 0x94e   :  { %10810 = vmatpush3.xpose.msra.mxu1 %v7689_v18  ;;  %10811 = vmatprep.mubr.msk.f32.mxu1 %vm11389_vm1, %v11388_v46 }
 0x94f   :  { %10814 = vmatprep.subr.mxu1 %v11388_v46 }
 0x955   :  { %10812 = vmatmul.mubr.f32.vlgmr.msra.gmra.mrb[18].mxu1 %v7678_v17 }
 0x956   :  { %10815 = vmatpush3.xpose.msra.mxu1 %v7612_v16  ;;  %10816 = vmatprep.mubr.msk.f32.mxu1 %vm11389_vm1, %v11388_v46 }
 0x957   :  { %10819 = vmatprep.subr.mxu1 %v11388_v46 }
 0x95d   :  { %10817 = vmatmul.mubr.f32.vlgmr.msra.gmra.mrb[18].mxu1 %v7679_v19 }
 0x95e   :  { %10820 = vmatpush3.xpose.msra.mxu1 %v7690_v20  ;;  %10821 = vmatprep.mubr.msk.f32.mxu1 %vm11389_vm1, %v11388_v46 }
 0x95f   :  { %10824 = vmatprep.subr.mxu1 %v11388_v46 }
 0x965   :  { %10822 = vmatmul.mubr.f32.vlgmr.msra.gmra.mrb[18].mxu1 %v7677_v15 }
 0x966   :  { %10825 = vmatpush3.xpose.msra.mxu1 %v7612_v16  ;;  %10826 = vmatprep.mubr.msk.f32.mxu1 %vm11389_vm1, %v11388_v46 }
 0x967   :  { %10859 = vmatprep.subr.mxu1 %v11388_v46 }
 0x96d   :  { %10827 = vmatmul.mubr.f32.vlgmr.msra.gmra.mrb[18].mxu1 %v7677_v15 }
 0x96e   :  { %10861 = vmatprep.mubr.msk.f32.mxu1 %vm11389_vm1, %v11388_v46 }
 0x9e8   :  { %v6650_v30 = vpop.f32.mrb[10].mxu0 }
 0x9e9   :  { %v7107_v31 = vsel %vm610_vm2, %v6650_v30, 0  ;;  %v10738_v32 = vpop.f32.mrb[11].mxu0 }
 0x9ea   :  { %v7178_v34 = vand.u32 4294901760, %v7107_v31 }
 0x9ec   :  { %v7179_v35 = vsub.f32 %v7107_v31, %v7178_v34 }
 0x9ee   :  { %v7180_v36 = vand.u32 4294901760, %v7179_v35 }
 0x9f0   :  { %v7181_v37 = vsub.f32 %v7179_v35, %v7180_v36 }
 0x9f2   :  { %v7182_v38 = vand.u32 4294901760, %v7181_v37 }
 0x9f4   :  { %10771 = vmatprep.mubr.f32.mxu0 %v7182_v38 }
 0xa14   :  { %v7102_v39 = vpop.f32.mrb[16].mxu1 }
 0xa15   :  { %v7110_v40 = vsel %vm610_vm2, %v7102_v39, 0  ;;  %v10768_v41 = vpop.f32.mrb[17].mxu1 }
 0xa16   :  { %v7188_v42 = vand.u32 4294901760, %v7110_v40 }
 0xa18   :  { %v7189_v43 = vsub.f32 %v7110_v40, %v7188_v42 }
 0xa1a   :  { %v7190_v44 = vand.u32 4294901760, %v7189_v43 }
 0xa1c   :  { %v7191_v45 = vsub.f32 %v7189_v43, %v7190_v44 }
 0xa1e   :  { %v7192_v47 = vand.u32 4294901760, %v7191_v45 }
 0xa20   :  { %10772 = vmatmul.mubr.f32.vlgmr.msra.gmra.mrb[8].mxu0 %v7192_v47 }
 0xa21   :  { %10776 = vmatprep.mubr.f32.mxu0 %v7178_v34  ;;  %10775 = vmatpush3.msra.mxu0 %v7203_v27 }
 0xa22   :  { %10779 = vmatprep.subr.mxu0 %v7200_v26 }
 0xa28   :  { %10777 = vmatmul.mubr.f32.vlgmr.msra.gmra.mrb[8].mxu0 %v7188_v42 }
 0xa29   :  { %10781 = vmatprep.mubr.f32.mxu0 %v7179_v35  ;;  %10780 = vmatpush3.msra.mxu0 %v7200_v26 }
 0xa2a   :  { %10784 = vmatprep.subr.mxu0 %v7113_v25 }
 0xa30   :  { %10782 = vmatmul.mubr.f32.vlgmr.msra.gmra.mrb[8].mxu0 %v7189_v43 }
 0xa31   :  { %10786 = vmatprep.mubr.f32.mxu0 %v7180_v36  ;;  %10785 = vmatpush3.msra.mxu0 %v7113_v25 }
 0xa32   :  { %10789 = vmatprep.subr.mxu0 %v7201_v28 }
 0xa38   :  { %10787 = vmatmul.mubr.f32.vlgmr.msra.gmra.mrb[8].mxu0 %v7190_v44  ;;  %v606_v44 = vld [vmem:[#allocation7 + $0x18] sm:$0xff] }
 0xa39   :  { %10791 = vmatprep.mubr.f32.mxu0 %v7178_v34  ;;  %10790 = vmatpush3.msra.mxu0 %v7201_v28  ;;  %v9447_v45 = vand.u32 4294901760, %v606_v44 }
 0xa3a   :  { %10794 = vmatprep.subr.mxu0 %v7113_v25 }
 0xa3b   :  { %v9534_v47 = vsub.f32 %v606_v44, %v9447_v45 }
 0xa3d   :  { %v9535_v48 = vand.u32 4294901760, %v9534_v47 }
 0xa3f   :  { %v9536_v50 = vsub.f32 %v9534_v47, %v9535_v48 }
 0xa40   :  { %10792 = vmatmul.mubr.f32.vlgmr.msra.gmra.mrb[8].mxu0 %v7188_v42  ;;  %v8053_v58 = vpop.f32.mrb[18].mxu1 }
 0xa41   :  { %10795 = vmatpush3.msra.mxu0 %v7113_v25  ;;  %10796 = vmatprep.mubr.f32.mxu0 %v7178_v34  ;;  %v10828_v59 = vpop.f32.mrb[19].mxu1  ;;  %v8511_v60 = vsel %vm610_vm2, %v8053_v58, -inf  ;;  %v9537_v51 = vand.u32 4294901760, %v9536_v50 }
 0xa42   :  { %8512 = vmax.xlane.f32.xlu1 %v8511_v60  ;;  %10829 = vmatprep.subr.mxu0 %v11388_v46 }
 0xa48   :  { %10797 = vmatmul.mubr.f32.vlgmr.msra.gmra.mrb[8].mxu0 %v7188_v42 }
 0xa49   :  { %10830 = vmatpush3.xpose.msra.mxu0 %v8066_v55  ;;  %10831 = vmatprep.mubr.msk.f32.mxu0 %vm11389_vm1, %v11388_v46 }
 0xa4a   :  { %10834 = vmatprep.subr.mxu0 %v11388_v46 }
 0xa4c   :  { %10832 = vmatmul.mubr.f32.vlgmr.msra.gmra.mrb[12].mxu0 %v8135_v1 }
 0xa4d   :  { %10835 = vmatpush3.xpose.msra.mxu0 %v8146_v2  ;;  %10836 = vmatprep.mubr.msk.f32.mxu0 %vm11389_vm1, %v11388_v46 }
 0xa4e   :  { %10839 = vmatprep.subr.mxu0 %v11388_v46 }
 0xa54   :  { %10837 = vmatmul.mubr.f32.vlgmr.msra.gmra.mrb[12].mxu0 %v8131_v54 }
 0xa55   :  { %10840 = vmatpush3.xpose.msra.mxu0 %v8143_v57  ;;  %10841 = vmatprep.mubr.msk.f32.mxu0 %vm11389_vm1, %v11388_v46 }
 0xa56   :  { %10844 = vmatprep.subr.mxu0 %v11388_v46 }
 0xa5c   :  { %10842 = vmatmul.mubr.f32.vlgmr.msra.gmra.mrb[12].mxu0 %v8132_v56 }
 0xa5d   :  { %10845 = vmatpush3.xpose.msra.mxu0 %v8066_v55  ;;  %10846 = vmatprep.mubr.msk.f32.mxu0 %vm11389_vm1, %v11388_v46 }
 0xa5e   :  { %10849 = vmatprep.subr.mxu0 %v11388_v46 }
 0xa64   :  { %10847 = vmatmul.mubr.f32.vlgmr.msra.gmra.mrb[12].mxu0 %v8133_v61 }
 0xa65   :  { %10850 = vmatpush3.xpose.msra.mxu0 %v8144_v62  ;;  %10851 = vmatprep.mubr.msk.f32.mxu0 %vm11389_vm1, %v11388_v46 }
 0xa66   :  { %10854 = vmatprep.subr.mxu0 %v11388_v46 }
 0xa6c   :  { %10852 = vmatmul.mubr.f32.vlgmr.msra.gmra.mrb[12].mxu0 %v8131_v54 }
 0xa6d   :  { %10855 = vmatpush3.xpose.msra.mxu0 %v8066_v55  ;;  %10856 = vmatprep.mubr.msk.f32.mxu0 %vm11389_vm1, %v11388_v46 }
 0xa6e   :  { %10889 = vmatprep.subr.mxu0 %v11388_v46 }
 0xa74   :  { %10857 = vmatmul.mubr.f32.vlgmr.msra.gmra.mrb[12].mxu0 %v8131_v54 }
 0xa75   :  { %10891 = vmatprep.mubr.msk.f32.mxu0 %vm11389_vm1, %v11388_v46 }
 0xacf   :  { %v8513_v3 = vpop.xlane.xlu1 %8512 }
 0xad0   :  { %v8517_v4 = vsub.f32 %v8053_v58, %v8513_v3 }
 0xad2   :  { %v8519_v5 = vmul.f32 1.442695, %v8517_v4 }
 0xad4   :  { %11257 = vpow2.f32 %v8519_v5 }
 0xade   :  { %v11258_v6 = vpop.eup %11257 }
 0xadf   :  { %v8523_v7 = vsel %vm610_vm2, %v11258_v6, 0.0 }
 0xae0   :  { %8524 = vadd.xlane.f32.xlu1 %v8523_v7 }
 0xb47   :  { %v8507_v8 = vpop.f32.mrb[12].mxu0 }
 0xb48   :  { %v10858_v9 = vpop.f32.mrb[13].mxu0  ;;  %v8514_v10 = vsel %vm610_vm2, %v8507_v8, -inf }
 0xb49   :  { %8515 = vmax.xlane.f32.xlu0 %v8514_v10 }
 0xb5f   :  { %8988 = vrot.lane.b32.xlu0 %v11505_v49, %s11400_s15 }
 0xb6d   :  { %v8525_v11 = vpop.xlane.xlu1 %8524 }
 0xb6e   :  { %11259 = vrcp.f32 %v8525_v11 }
 0xb78   :  { %v11260_v12 = vpop.eup %11259 }
 0xb79   :  { %v8530_v13 = vmul.f32 %v11260_v12, %v11258_v6 }
 0xb7b   :  { %8534 = vst.msk [vmem:[#allocation9 + $0x18] sm:$0xff] %vm610_vm2, %v8530_v13  ;;  %v8540_v20 = vsel %vm610_vm2, %v8530_v13, 0 }
 0xb7c   :  { %v8608_v21 = vand.u32 4294901760, %v8540_v20 }
 0xb7e   :  { %v8609_v22 = vsub.f32 %v8540_v20, %v8608_v21 }
 0xb80   :  { %v8610_v23 = vand.u32 4294901760, %v8609_v22 }
 0xb82   :  { %v8611_v24 = vsub.f32 %v8609_v22, %v8610_v23 }
 0xb84   :  { %v8612_v28 = vand.u32 4294901760, %v8611_v24 }
 0xbd6   :  { %v8516_v14 = vpop.xlane.xlu0 %8515 }
 0xbd7   :  { %v8518_v15 = vsub.f32 %v8507_v8, %v8516_v14 }
 0xbd9   :  { %v8521_v16 = vmul.f32 1.442695, %v8518_v15 }
 0xbda   :  { %v8989_v17 = vpop.permute.xlu0 %8988 }
 0xbdb   :  { %11261 = vpow2.f32 %v8521_v16  ;;  %v11923_v18 = vand.u32 4294901760, %v8989_v17 }
 0xbdd   :  { %10890 = vmatpush3.msra.mxu0 %v11923_v18  ;;  %v9072_v31 = vsub.f32 %v8989_v17, %v11923_v18 }
 0xbde   :  { %10894 = vmatprep.subr.mxu0 %v11388_v46 }
 0xbdf   :  { %v9073_v37 = vand.u32 4294901760, %v9072_v31 }
 0xbe1   :  { %v9074_v40 = vsub.f32 %v9072_v31, %v9073_v37 }
 0xbe3   :  { %v9075_v43 = vand.u32 4294901760, %v9074_v40 }
 0xbe5   :  { %v11262_v19 = vpop.eup %11261 }
 0xbe6   :  { %v8526_v49 = vsel %vm610_vm2, %v11262_v19, 0.0 }
 0xbe7   :  { %8527 = vadd.xlane.f32.xlu1 %v8526_v49 }
 0xbf8   :  { %8536 = vrot.lane.b32.xlu1 %v11507_v52, %s11400_s15 }
 0xc74   :  { %v8528_v33 = vpop.xlane.xlu1 %8527 }
 0xc75   :  { %11263 = vrcp.f32 %v8528_v33 }
 0xc78   :  { %v8537_v25 = vpop.permute.xlu1 %8536 }
 0xc79   :  { %v8543_v26 = vand.u32 4294901760, %v8537_v25 }
 0xc7b   :  { %v8620_v29 = vsub.f32 %v8537_v25, %v8543_v26  ;;  %10860 = vmatpush3.msra.mxu1 %v8543_v26 }
 0xc7c   :  { %10862 = vmatmul.mubr.f32.vlgmr.msra.gmra.mrb[20].mxu1 %v8612_v28  ;;  %10864 = vmatprep.subr.mxu1 %v11388_v46 }
 0xc7d   :  { %v8621_v27 = vand.u32 4294901760, %v8620_v29  ;;  %10866 = vmatprep.mubr.msk.f32.mxu1 %vm11389_vm1, %v11388_v46 }
 0xc7f   :  { %v11264_v52 = vpop.eup %11263  ;;  %v8622_v30 = vsub.f32 %v8620_v29, %v8621_v27 }
 0xc80   :  { %v8532_v32 = vmul.f32 %v11264_v52, %v11262_v19 }
 0xc81   :  { %v8623_v34 = vand.u32 4294901760, %v8622_v30 }
 0xc82   :  { %8535 = vst.msk [vmem:[#allocation9 + $0x38] sm:$0xff] %vm610_vm2, %v8532_v32  ;;  %v8992_v35 = vsel %vm610_vm2, %v8532_v32, 0 }
 0xc83   :  { %10865 = vmatpush3.msra.mxu1 %v8623_v34  ;;  %v9060_v36 = vand.u32 4294901760, %v8992_v35 }
 0xc84   :  { %10867 = vmatmul.mubr.f32.vlgmr.msra.gmra.mrb[20].mxu1 %v8608_v21  ;;  %10869 = vmatprep.subr.mxu1 %v11388_v46 }
 0xc85   :  { %10870 = vmatpush3.msra.mxu1 %v8620_v29  ;;  %10871 = vmatprep.mubr.msk.f32.mxu1 %vm11389_vm1, %v11388_v46  ;;  %v9061_v38 = vsub.f32 %v8992_v35, %v9060_v36 }
 0xc86   :  { %10874 = vmatprep.subr.mxu1 %v11388_v46 }
 0xc87   :  { %v9062_v39 = vand.u32 4294901760, %v9061_v38 }
 0xc89   :  { %v9063_v41 = vsub.f32 %v9061_v38, %v9062_v39 }
 0xc8b   :  { %v9064_v42 = vand.u32 4294901760, %v9063_v41 }
 0xc8c   :  { %10872 = vmatmul.mubr.f32.vlgmr.msra.gmra.mrb[20].mxu1 %v8609_v22 }
 0xc8d   :  { %10875 = vmatpush3.msra.mxu1 %v8543_v26  ;;  %10892 = vmatmul.mubr.f32.vlgmr.msra.gmra.mrb[14].mxu0 %v9064_v42 }
 0xc8e   :  { %10895 = vmatpush3.msra.mxu0 %v9075_v43  ;;  %10876 = vmatprep.mubr.msk.f32.mxu1 %vm11389_vm1, %v11388_v46 }
 0xc8f   :  { %10879 = vmatprep.subr.mxu1 %v11388_v46  ;;  %10896 = vmatprep.mubr.msk.f32.mxu0 %vm11389_vm1, %v11388_v46 }
 0xc90   :  { %10899 = vmatprep.subr.mxu0 %v11388_v46 }
 0xc94   :  { %10877 = vmatmul.mubr.f32.vlgmr.msra.gmra.mrb[20].mxu1 %v8610_v23 }
 0xc95   :  { %10880 = vmatpush3.msra.mxu1 %v8621_v27  ;;  %10897 = vmatmul.mubr.f32.vlgmr.msra.gmra.mrb[14].mxu0 %v9060_v36 }
 0xc96   :  { %10900 = vmatpush3.msra.mxu0 %v9072_v31  ;;  %10881 = vmatprep.mubr.msk.f32.mxu1 %vm11389_vm1, %v11388_v46 }
 0xc97   :  { %10884 = vmatprep.subr.mxu1 %v11388_v46  ;;  %10901 = vmatprep.mubr.msk.f32.mxu0 %vm11389_vm1, %v11388_v46 }
 0xc98   :  { %10904 = vmatprep.subr.mxu0 %v11388_v46 }
 0xc9c   :  { %10882 = vmatmul.mubr.f32.vlgmr.msra.gmra.mrb[20].mxu1 %v8608_v21 }
 0xc9d   :  { %10885 = vmatpush3.msra.mxu1 %v8543_v26  ;;  %10902 = vmatmul.mubr.f32.vlgmr.msra.gmra.mrb[14].mxu0 %v9061_v38 }
 0xc9e   :  { %10905 = vmatpush3.msra.mxu0 %v11923_v18  ;;  %10886 = vmatprep.mubr.msk.f32.mxu1 %vm11389_vm1, %v11388_v46 }
 0xc9f   :  { %10906 = vmatprep.mubr.msk.f32.mxu0 %vm11389_vm1, %v11388_v46  ;;  %10909 = vmatprep.subr.mxu0 %v11388_v46 }
 0xca4   :  { %10887 = vmatmul.mubr.f32.vlgmr.msra.gmra.mrb[20].mxu1 %v8608_v21 }
 0xca5   :  { %10907 = vmatmul.mubr.f32.vlgmr.msra.gmra.mrb[14].mxu0 %v9062_v39 }
 0xca6   :  { %10910 = vmatpush3.msra.mxu0 %v9073_v37  ;;  %10911 = vmatprep.mubr.msk.f32.mxu0 %vm11389_vm1, %v11388_v46 }
 0xca7   :  { %10914 = vmatprep.subr.mxu0 %v11388_v46 }
 0xcad   :  { %10912 = vmatmul.mubr.f32.vlgmr.msra.gmra.mrb[14].mxu0 %v9060_v36 }
 0xcae   :  { %10915 = vmatpush3.msra.mxu0 %v11923_v18  ;;  %10916 = vmatprep.mubr.msk.f32.mxu0 %vm11389_vm1, %v11388_v46 }
 0xcaf   :  { %10919 = vmatprep.subr.mxu0 %v9447_v45 }
 0xcb5   :  { %10917 = vmatmul.mubr.f32.vlgmr.msra.gmra.mrb[14].mxu0 %v9060_v36 }
 0xcb6   :  { %10920 = vmatpush3.msra.mxu0 %v9447_v45 }
 0xcb7   :  { %10924 = vmatprep.subr.mxu0 %v9537_v51 }
 0xd77   :  { %v8984_v53 = vpop.f32.mrb[20].mxu1 }
 0xd78   :  { %v9441_v54 = vsel %vm610_vm2, %v8984_v53, 0  ;;  %v10888_v55 = vpop.f32.mrb[21].mxu1 }
 0xd79   :  { %v9512_v56 = vand.u32 4294901760, %v9441_v54 }
 0xd7b   :  { %v9513_v57 = vsub.f32 %v9441_v54, %v9512_v56 }
 0xd7d   :  { %v9514_v58 = vand.u32 4294901760, %v9513_v57 }
 0xd7f   :  { %v9515_v59 = vsub.f32 %v9513_v57, %v9514_v58 }
 0xd81   :  { %v9516_v60 = vand.u32 4294901760, %v9515_v59 }
 0xd83   :  { %10921 = vmatprep.mubr.f32.mxu0 %v9516_v60 }
 0xd88   :  { %v9436_v46 = vpop.f32.mrb[14].mxu0 }
 0xd89   :  { %v9444_v61 = vsel %vm610_vm2, %v9436_v46, 0  ;;  %v10918_v62 = vpop.f32.mrb[15].mxu0 }
 0xd8a   :  { %v9522_v63 = vand.u32 4294901760, %v9444_v61 }
 0xd8c   :  { %v9523_v0 = vsub.f32 %v9444_v61, %v9522_v63 }
 0xd8e   :  { %v9524_v1 = vand.u32 4294901760, %v9523_v0 }
 0xd90   :  { %v9525_v2 = vsub.f32 %v9523_v0, %v9524_v1 }
 0xd92   :  { %v9526_v3 = vand.u32 4294901760, %v9525_v2 }
 0xd94   :  { %10922 = vmatmul.mubr.f32.vlgmr.msra.gmra.mrb[8].mxu0 %v9526_v3 }
 0xd95   :  { %10926 = vmatprep.mubr.f32.mxu0 %v9512_v56  ;;  %10925 = vmatpush3.msra.mxu0 %v9537_v51 }
 0xd96   :  { %10929 = vmatprep.subr.mxu0 %v9534_v47 }
 0xd9c   :  { %10927 = vmatmul.mubr.f32.vlgmr.msra.gmra.mrb[8].mxu0 %v9522_v63 }
 0xd9d   :  { %10931 = vmatprep.mubr.f32.mxu0 %v9513_v57  ;;  %10930 = vmatpush3.msra.mxu0 %v9534_v47 }
 0xd9e   :  { %10934 = vmatprep.subr.mxu0 %v9447_v45 }
 0xda4   :  { %10932 = vmatmul.mubr.f32.vlgmr.msra.gmra.mrb[8].mxu0 %v9523_v0 }
 0xda5   :  { %10936 = vmatprep.mubr.f32.mxu0 %v9514_v58  ;;  %10935 = vmatpush3.msra.mxu0 %v9447_v45 }
 0xda6   :  { %10939 = vmatprep.subr.mxu0 %v9535_v48 }
 0xdac   :  { %10937 = vmatmul.mubr.f32.vlgmr.msra.gmra.mrb[8].mxu0 %v9524_v1 }
 0xdad   :  { %10941 = vmatprep.mubr.f32.mxu0 %v9512_v56  ;;  %10940 = vmatpush3.msra.mxu0 %v9535_v48 }
 0xdae   :  { %10944 = vmatprep.subr.mxu0 %v9447_v45 }
 0xdb4   :  { %10942 = vmatmul.mubr.f32.vlgmr.msra.gmra.mrb[8].mxu0 %v9522_v63 }
 0xdb5   :  { %10946 = vmatprep.mubr.f32.mxu0 %v9512_v56  ;;  %10945 = vmatpush3.msra.mxu0 %v9447_v45 }
 0xdbc   :  { %10947 = vmatmul.mubr.f32.vlgmr.msra.gmra.mrb[8].mxu0 %v9522_v63 }
 0xdbd   :  { %11342 = shalt.err (!%p11339_p0)
}
 0xdbe   :  { %s11343_s20 = scalar_lea.hbm %s12006_s5, 1024 }
 0xdbf   :  { %p11344_p1 = scmp.ne.s32.totalorder %s12006_s5, %s11343_s20  ;;  %p11347_p2 = scmp.lt.u32.totalorder %s11343_s20, %s12006_s5 }
 0xdc1   :  { %p11349_p3 = pnand %p11347_p2, %p11344_p1 }
 0xdc3   :  { %11352 = shalt.err (!%p11349_p3)
}
 0xdc4   :  { %9971 = dma.vmem_to_hbm [thread:$0]  %s9966_s1, 1024, %s12006_s5, [#allocation10], %s11385_s30, %s11385_s30, %s11386_s6  }
 0xdc5   :  { %v9982_v4 = vld [vmem:[%s12004_s3] ss:$0 sm:$0xff]  ;;  %s11402_s21 = smov [#allocation8]  }
 0xdc6   :  { %s9953_s2 = sshll.u32 %s11402_s21, 4  ;;  %s9954_s2 = int_to_ptr.vmem [resolvable:$true] %s9953_s2 }
 0xdc7   :  { %s11353_s29 = scalar_lea.vmem %s9954_s2, 256  ;;  %p11358_p5 = scmp.lt.s32.totalorder %s9954_s2, %s9954_s2 }
 0xdc8   :  { %p11354_p4 = scmp.ne.s32.totalorder %s9954_s2, %s11353_s29  ;;  %p11359_p6 = scmp.lt.s32.totalorder %s11353_s29, %s11353_s29 }
 0xdca   :  { %p11360_p7 = por %p11359_p6, %p11358_p5 }
 0xdcc   :  { %p11361_p8 = pnand %p11360_p7, %p11354_p4 }
 0xe8f   :  { %v10948_v5 = vpop.f32.mrb[8].mxu0 }
 0xe90   :  { %v9945_v6 = vadd.f32 %v10948_v5, %v9982_v4  ;;  %v9925_v7 = vpop.f32.mrb[9].mxu0 }
 0xe91   :  { %v9944_v8 = vadd.f32 %v9982_v4, %v9925_v7 }
 0xe92   :  { %9947 = vst.msk [vmem:[#allocation8 + $0x8] sm:$0xff] %vm68_vm0, %v9945_v6 }
 0xe93   :  { %9946 = vst.msk [vmem:[#allocation8] sm:$0xff] %vm68_vm0, %v9944_v8 }
 0xe94   :  { %11364 = shalt.err (!%p11361_p8)
}
 0xe95   :  { %s11365_s7 = scalar_lea.hbm %s12005_s4, 256 }
 0xe96   :  { %p11366_p9 = scmp.ne.s32.totalorder %s12005_s4, %s11365_s7  ;;  %p11369_p10 = scmp.lt.u32.totalorder %s11365_s7, %s12005_s4 }
 0xe98   :  { %p11371_p11 = pnand %p11369_p10, %p11366_p9 }
 0xe9a   :  { %11374 = shalt.err (!%p11371_p11)
}
 0xe9b   :  { %9959 = dma.vmem_to_hbm [thread:$0]  %s9954_s2, 256, %s12005_s4, [#allocation4], %s11385_s30, %s11385_s30, %s11386_s6  }
 0xe9c   :  { %11379 = dma.done.wait [#allocation4], 256  }
 0xe9d   :  { %11380 = vsyncadd [#allocation4], 4294967040 }
 0xe9e   :  { %11381 = dma.done.wait [#allocation10], 1024  }
 0xe9f   :  { %11382 = vsyncadd [#allocation10], 4294966272 }
 0xea0   :  { %9978 = vsyncpa [#allocation3], 1 }
 0xea1   :  { %9979 = vsyncpa [#allocation6], 1 }
 0xea2   :  { %9980 = vsyncpa [#allocation4], 1 }
 0xea3   :  { %9981 = vsyncpa [#allocation10], 1 }

</bundles_post_ra>
